<compile_context>
chip_gen: v7x
topology: tpu7x:2x2x1
jax: 0.10.0
libtpu: 0.0.40
codegen_flags: <defaults>
</compile_context>

<pallas_src>
import numpy as np
import jax
import jax.numpy as jnp
from jax import lax
from jax.experimental import pallas as pl
from jax.experimental.pallas import tpu as pltpu

# ----------------------------- configuration --------------------------------
N_ENT = 32
N_REL = 4
HIDDEN = 32
ATTN = 32
LN_EPS = 1e-5
R_TOT = 2 * N_REL + 2          # number of relation embeddings

_VMEM = pl.BlockSpec(memory_space=pltpu.MemorySpace.VMEM)


def _dot(a, b, bf16=False):
    """Matmul with f32 accumulation; optional bf16 operands (used only for the
    one-hot gather contractions, where the one-hot side is exact in bf16)."""
    if bf16:
        a = a.astype(jnp.bfloat16)
        b = b.astype(jnp.bfloat16)
    return jnp.dot(a, b, preferred_element_type=jnp.float32)


def _ln_relu(y):
    # one-pass LayerNorm (no affine): var = E[y^2] - mu^2 (one XLU reduce saved)
    mu = jnp.mean(y, axis=-1, keepdims=True)
    ms = jnp.mean(y * y, axis=-1, keepdims=True)
    var = jnp.maximum(ms - mu * mu, 0.0)
    return jnp.maximum((y - mu) * lax.rsqrt(var + LN_EPS), 0.0)


# ----------------------- Kernel A: fused GNN layer 1 --------------------------
def fused_gnn_layer1(p, query_pad, layer_input, edge_slab, obj_row, residual):
    """GNNLayer.forward fused: relation_trans -> gather(input_j, relation_j)
    -> DistMult -> scatter-sum -> W_h -> LayerNorm -> ReLU -> (+ residual)."""
    q_rows, H = query_pad.shape
    s_in = layer_input.shape[0]
    e_pad = edge_slab.shape[0]
    s_pad = residual.shape[0]

    def kernel(q_ref, relemb_ref, wt_ref, bt_ref, wh_ref, li_ref,
               slab_ref, obj_ref, res_ref, o_ref):
        # relation = cat([query, rel_embed]) @ Wt + bt with split weight halves;
        # the two projections are row-stacked at an aligned offset (q_rows is a
        # multiple of 8) so the per-edge gather below is ONE MXU contraction.
        qp = _dot(q_ref[...], wt_ref[0:H, :])                          # (q_rows, H)
        rp = _dot(relemb_ref[...], wt_ref[H:2 * H, :]) + bt_ref[...]   # (R_TOT, H)
        stacked = jnp.concatenate([qp, rp], axis=0)                    # (q_rows+R, H)

        slab = slab_ref[...]
        bidx = slab[:, 0:1]      # batch index per edge
        rel = slab[:, 1:2]       # relation per edge
        sub = slab[:, 2:3]       # head_index per edge

        # rel_j = relation[batch, rel] = qp[batch] + rp[rel]: combined one-hot,
        # ONE bf16 gather matmul instead of two (degenerate K=2 gather removed).
        col = lax.broadcasted_iota(jnp.int32, (e_pad, q_rows + R_TOT), 1)
        oh_qr = ((col == bidx) | (col == rel + q_rows)).astype(jnp.float32)
        rel_j = _dot(oh_qr, stacked, bf16=True)                        # (E, H)

        # input_j = layer_input[sub] (bf16 one-hot gather).
        col_s = lax.broadcasted_iota(jnp.int32, (e_pad, s_in), 1)
        oh_s = (col_s == sub).astype(jnp.float32)
        inp_j = _dot(oh_s, li_ref[...], bf16=True)                     # (E, H)

        # DistMult message.  Padded edges carry out-of-range sentinels in every
        # index field -> both gathers above give zero rows AND the scatter
        # below drops them (no emask input/multiply needed).
        msg = inp_j * rel_j

        # scatter-sum over obj (kept f32 for accuracy) as an MXU contraction.
        row_o = lax.broadcasted_iota(jnp.int32, (s_pad, e_pad), 0)
        oh_o = (row_o == obj_ref[...]).astype(jnp.float32)
        agg = _dot(oh_o, msg)                                          # (S, H)

        h = _dot(agg, wh_ref[...])                                     # W_h (f32)
        o_ref[...] = _ln_relu(h) + res_ref[...]                        # fused residual

    flops = 2 * (q_rows * H * H + R_TOT * H * H
                 + e_pad * (q_rows + R_TOT) * H + e_pad * s_in * H
                 + s_pad * e_pad * H + s_pad * H * H)
    args = (query_pad, p['l1_rel_embed'], p['l1_rel_trans_w'],
            p['l1_rel_trans_b'].reshape(1, H), p['l1_W_h'],
            layer_input, edge_slab, obj_row, residual)
    bytes_accessed = sum(int(np.prod(a.shape)) * a.dtype.itemsize for a in args) \
        + s_pad * H * 4

    return pl.pallas_call(
        kernel,
        out_shape=jax.ShapeDtypeStruct((s_pad, H), jnp.float32),
        in_specs=[_VMEM] * 9,
        out_specs=_VMEM,
        cost_estimate=pl.CostEstimate(flops=int(flops), transcendentals=int(s_pad),
                                      bytes_accessed=int(bytes_accessed)),
    )(*args)


# ------- Kernel B: fused node scatter + bridge MLP + forward2 + final head ----
def fused_bridge_layer2_head(p, hidden1, node_slab, query, query2, kg_slab, kg_obj):
    n, H = query.shape
    A = ATTN
    s_pad = hidden1.shape[0]
    E2 = kg_slab.shape[0]

    q3 = query.reshape(n, 1, H)
    q23 = query2.reshape(n, 1, A)
    bw1 = p['bridge_w1']                       # (2H, H)  concat folded in weight
    bw2 = p['bridge_w2']                       # (H, A)
    relemb2 = p['l2_rel_embed']                # (R_TOT, A)
    wt2 = p['l2_rel_trans_w']                  # (2A, A)
    bt2 = p['l2_rel_trans_b'].reshape(1, A)
    wh2 = p['l2_W_h']                          # (A, A)
    fw1 = p['final_w1']                        # (2A, A)
    fb1 = p['final_b1'].reshape(1, A)
    fw2r = p['final_w2'].reshape(1, A)         # (A,1) column used as a lane row
    fb2 = p['final_b2'].reshape(1, 1)

    def kernel(h1_ref, nslab_ref, q_ref, q2_ref, kgslab_ref, kgobj_ref,
               bw1_ref, bw2_ref, relemb2_ref, wt2_ref, bt2_ref, wh2_ref,
               fw1_ref, fb1_ref, fw2_ref, fb2_ref, o_ref):
        b = pl.program_id(0)
        qh = q_ref[0]                                   # (1, H)
        q2e = q2_ref[0]                                 # (1, A)

        # ---- dense per-entity block for batch b (layer_output scatter moved
        #      in-kernel: one bf16 one-hot contraction, no XLA scatter/HBM hop)
        bid = nslab_ref[0:1, :]                         # (1, s_pad)
        eid = nslab_ref[1:2, :]
        ent = lax.broadcasted_iota(jnp.int32, (N_ENT, s_pad), 0)
        oh_node = ((bid == b) & (eid == ent)).astype(jnp.float32)
        lo = _dot(oh_node, h1_ref[...], bf16=True)      # (N_ENT, H)

        # ---- bridge MLP: relu(cat([layer_output, query]) @ w1) @ w2, with the
        #      concat fused along K into ONE matmul (K = 2H) ----
        qb = jnp.broadcast_to(qh, (N_ENT, H))
        h1 = jnp.maximum(_dot(jnp.concatenate([lo, qb], axis=1), bw1_ref[...]), 0.0)
        li2 = _dot(h1, bw2_ref[...])                    # (N_ENT, A)

        # ---- GNNLayer.forward2 (DistMult + scatter-sum over entities) ----
        # relation_trans consumes query2 (attn-dim query), concat fused along K.
        q2b = jnp.broadcast_to(q2e, (R_TOT, A))
        rel_full = _dot(jnp.concatenate([q2b, relemb2_ref[...]], axis=1),
                        wt2_ref[...]) + bt2_ref[...]    # (R_TOT, A)

        sub2 = kgslab_ref[:, 0:1]
        rel2 = kgslab_ref[:, 1:2]
        col_e = lax.broadcasted_iota(jnp.int32, (E2, N_ENT), 1)
        oh_sub = (col_e == sub2).astype(jnp.float32)
        inp_j = _dot(oh_sub, li2, bf16=True)            # (E2, A)
        col_r = lax.broadcasted_iota(jnp.int32, (E2, R_TOT), 1)
        oh_rel = (col_r == rel2).astype(jnp.float32)
        rel_j = _dot(oh_rel, rel_full, bf16=True)       # (E2, A)
        msg = inp_j * rel_j
        row_o = lax.broadcasted_iota(jnp.int32, (N_ENT, E2), 0)
        oh_obj = (row_o == kgobj_ref[...]).astype(jnp.float32)
        agg = _dot(oh_obj, msg)                         # (N_ENT, A), f32 scatter
        hid2 = _ln_relu(_dot(agg, wh2_ref[...]))        # W_h -> LN -> ReLU
        li2b = hid2 + li2                               # fused residual

        # ---- final head, concat fused along K; lane-dense (1, N_ENT) row ----
        q2be = jnp.broadcast_to(q2e, (N_ENT, A))
        fh = jnp.maximum(_dot(jnp.concatenate([li2b, q2be], axis=1), fw1_ref[...])
                         + fb1_ref[...], 0.0)           # (N_ENT, A)
        score = lax.dot_general(fw2_ref[...], fh, (((1,), (1,)), ((), ())),
                                preferred_element_type=jnp.float32) + fb2_ref[...]
        o_ref[0] = score                                # dense (1, N_ENT) store

    def _const(arr):
        return pl.BlockSpec(arr.shape, lambda b, _r=arr.ndim: (0,) * _r)

    flops = 2 * n * (N_ENT * s_pad * H + N_ENT * 2 * H * H + N_ENT * H * A
                     + R_TOT * 2 * A * A + E2 * N_ENT * A + E2 * R_TOT * A
                     + N_ENT * E2 * A + N_ENT * A * A + N_ENT * 2 * A * A
                     + N_ENT * A)
    args = (hidden1, node_slab, q3, q23, kg_slab, kg_obj,
            bw1, bw2, relemb2, wt2, bt2, wh2, fw1, fb1, fw2r, fb2)
    bytes_accessed = sum(int(np.prod(a.shape)) * a.dtype.itemsize for a in args) \
        + n * N_ENT * 4

    # NOTE: with batch=2, grid=(2,) already gives one step per v7x TensorCore;
    # for larger batches this kernel would block several batches per grid step.
    out = pl.pallas_call(
        kernel,
        out_shape=jax.ShapeDtypeStruct((n, 1, N_ENT), jnp.float32),
        grid=(n,),
        in_specs=[
            _const(hidden1), _const(node_slab),
            pl.BlockSpec((1, 1, H), lambda b: (b, 0, 0)),    # query[b]
            pl.BlockSpec((1, 1, A), lambda b: (b, 0, 0)),    # query2[b]
            _const(kg_slab), _const(kg_obj),
            _const(bw1), _const(bw2), _const(relemb2), _const(wt2), _const(bt2),
            _const(wh2), _const(fw1), _const(fb1), _const(fw2r), _const(fb2),
        ],
        out_specs=pl.BlockSpec((1, 1, N_ENT), lambda b: (b, 0, 0)),
        compiler_params=pltpu.CompilerParams(
            dimension_semantics=("parallel",)),
        cost_estimate=pl.CostEstimate(flops=int(flops),
                                      transcendentals=int(n * N_ENT),
                                      bytes_accessed=int(bytes_accessed)),
    )(*args)
    return out.reshape(n, N_ENT)


# --------------------- single-jit device-side forward -------------------------
@jax.jit
def device_forward(p, q_rel, edge_slab, obj_row, old_idx, node_slab,
                   kg_slab, kg_obj):
    n = q_rel.shape[0]
    s_pad = node_slab.shape[1]
    query = p['rela_embed'][q_rel]                    # (n, HIDDEN)
    query2 = p['rela_embed2'][q_rel]                  # (n, ATTN)
    layer_input = jnp.ones((n, HIDDEN), jnp.float32)

    # queries padded to a sublane multiple so the in-kernel row stack of
    # [query-proj ; rel-proj] lands on an aligned offset.
    q_rows = max(8, ((n + 7) // 8) * 8)
    query_pad = jnp.zeros((q_rows, HIDDEN), jnp.float32).at[:n].set(query)

    # previous-hidden residual for the self-loop ("old") nodes: tiny
    # data-dependent XLA scatter, fused inside this single jit.
    residual = jnp.zeros((s_pad, HIDDEN), jnp.float32).at[old_idx].add(layer_input)

    hidden1 = fused_gnn_layer1(p, query_pad, layer_input, edge_slab, obj_row,
                               residual)
    scores = fused_bridge_layer2_head(p, hidden1, node_slab, query, query2,
                                      kg_slab, kg_obj)
    return scores


# ----------------------------- parameters ------------------------------------
def init_params(key):
    ks = jax.random.split(key, 16)
    s = 0.1
    p = {
        'rela_embed':     jax.random.normal(ks[0],  (R_TOT, HIDDEN)) * s,
        'rela_embed2':    jax.random.normal(ks[1],  (R_TOT, ATTN)) * s,
        # GNN layer 1 (hidden_dim)
        'l1_rel_embed':   jax.random.normal(ks[2],  (R_TOT, HIDDEN)) * s,
        'l1_rel_trans_w': jax.random.normal(ks[3],  (2 * HIDDEN, HIDDEN)) * s,
        'l1_rel_trans_b': jax.random.normal(ks[4],  (HIDDEN,)) * s,
        'l1_W_h':         jax.random.normal(ks[5],  (HIDDEN, HIDDEN)) * s,
        # GNN layer 2 (attn_dim)
        'l2_rel_embed':   jax.random.normal(ks[6],  (R_TOT, ATTN)) * s,
        'l2_rel_trans_w': jax.random.normal(ks[7],  (2 * ATTN, ATTN)) * s,
        'l2_rel_trans_b': jax.random.normal(ks[8],  (ATTN,)) * s,
        'l2_W_h':         jax.random.normal(ks[9],  (ATTN, ATTN)) * s,
        # bridge (no biases)
        'bridge_w1':      jax.random.normal(ks[10], (2 * HIDDEN, HIDDEN)) * s,
        'bridge_w2':      jax.random.normal(ks[11], (HIDDEN, ATTN)) * s,
        # final head (with biases)
        'final_w1':       jax.random.normal(ks[12], (2 * ATTN, ATTN)) * s,
        'final_b1':       jax.random.normal(ks[13], (ATTN,)) * s,
        'final_w2':       jax.random.normal(ks[14], (ATTN, 1)) * s,
        'final_b2':       jax.random.normal(ks[15], (1,)) * s,
    }
    return {k: v.astype(jnp.float32) for k, v in p.items()}


# ------------------------- synthetic knowledge graph -------------------------
def build_kg(seed=0):
    rng = np.random.RandomState(seed)
    E0 = 48
    h = rng.randint(0, N_ENT, size=E0)
    t = rng.randint(0, N_ENT, size=E0)
    r = rng.randint(0, N_REL, size=E0)
    base = np.stack([h, r, t], axis=1)
    inv = np.stack([t, r + N_REL, h], axis=1)
    loops = np.stack([np.arange(N_ENT),
                      np.full(N_ENT, 2 * N_REL),
                      np.arange(N_ENT)], axis=1)
    KG = np.concatenate([base, inv, loops], axis=0).astype(np.int64)   # 128 edges
    M_sub = np.zeros((len(KG), N_ENT), dtype=np.float64)
    M_sub[np.arange(len(KG)), KG[:, 0]] = 1.0
    return KG, M_sub


# -------------- host-side neighbor sampling (get_neighbors glue) -------------
# TODO(synk): scipy-csr / torch.unique graph sampling has no Pallas equivalent;
# replicated faithfully on host with dense numpy (data-dependent shapes).
def get_neighbors(nodes, batchsize, total_node_1hot, filter_mask, layer_id,
                  KG, M_sub):
    node_1hot = np.zeros((N_ENT, batchsize))
    np.add.at(node_1hot, (nodes[:, 1], nodes[:, 0]), 1.0)
    node_triples = M_sub[:, nodes[:, 1]] * filter_mask            # (E, n_nodes)
    rows, cols = np.nonzero(node_triples)
    edges_value = nodes[:, 0][cols]
    sampled = np.concatenate([edges_value[:, None], KG[rows]], axis=1)  # [b,h,r,t]
    head_nodes, head_index = np.unique(sampled[:, [0, 1]], axis=0,
                                       return_inverse=True)
    tail_nodes, tail_index = np.unique(sampled[:, [0, 3]], axis=0,
                                       return_inverse=True)
    head_index = head_index.reshape(-1)
    tail_index = tail_index.reshape(-1)
    sampled = np.concatenate(
        [sampled, head_index[:, None], tail_index[:, None]], axis=1)
    mask = sampled[:, 2] == N_REL * 2
    old_nodes_new_idx = np.sort(tail_index[mask])
    total_node_1hot = total_node_1hot + node_1hot
    return tail_nodes, sampled, node_1hot, total_node_1hot, old_nodes_new_idx


# ------------------------------ model forward ---------------------------------
def gnn_model_forward(p, triples, KG, M_sub, return_aux=False):
    n = len(triples)
    triples = np.asarray(triples, dtype=np.int64)
    q_sub, q_rel = triples[:, 0], triples[:, 1]
    start_nodes = np.stack([np.arange(n), q_sub], axis=1)

    # mode='eval': keep every KG edge; edge_count unused for AGG_FUNC='sum'.
    filter_mask = np.ones((len(KG), 1))

    # ---- host-side neighbor sampling (single propagation layer) ----
    nodes, edges, _eh, _tot, old_idx = get_neighbors(
        start_nodes, n, 0.0, filter_mask, 0, KG, M_sub)
    E, S_out = len(edges), len(nodes)
    # static buckets: no per-batch recompiles; 128-aligned edge contraction.
    e_pad = max(128, ((E + 127) // 128) * 128)
    s_pad = max(8, ((S_out + 7) // 8) * 8)

    # edge metadata packed into ONE (e_pad, 8) int32 slab + lane-dense obj row.
    # Padded edges use out-of-range sentinels so every in-kernel one-hot drops
    # them (no emask input needed).
    slab = np.zeros((e_pad, 8), np.int32)
    slab[:, 0] = -1
    slab[:, 1] = R_TOT
    slab[:, 2] = -1
    slab[:E, 0] = edges[:, 0]          # batch idx
    slab[:E, 1] = edges[:, 2]          # relation
    slab[:E, 2] = edges[:, 4]          # sub (head_index)
    obj_row = np.full((1, e_pad), -1, np.int32)
    obj_row[0, :E] = edges[:, 5]       # obj (tail_index)

    # frontier node ids (batch, entity) for the in-kernel layer_output scatter.
    node_slab = np.full((8, s_pad), -1, np.int32)
    node_slab[0, :S_out] = nodes[:, 0]
    node_slab[1, :S_out] = nodes[:, 1]

    # batch-invariant KG edge indices for forward2 (E2 = 128, MXU-aligned).
    kg_slab = np.zeros((len(KG), 8), np.int32)
    kg_slab[:, 0] = KG[:, 0]
    kg_slab[:, 1] = KG[:, 1]
    kg_obj = KG[:, 2].astype(np.int32).reshape(1, -1)

    scores = device_forward(
        p, jnp.asarray(q_rel.astype(np.int32)), jnp.asarray(slab),
        jnp.asarray(obj_row), jnp.asarray(old_idx.astype(np.int32)),
        jnp.asarray(node_slab), jnp.asarray(kg_slab), jnp.asarray(kg_obj))

    if return_aux:
        aux = dict(q_rel=q_rel, edges=edges, nodes=nodes, old_idx=old_idx)
        return scores, aux
    return scores


# --------------------------- f64 numpy reference ------------------------------
def reference_forward(p, aux, KG):
    """Pure numpy float64 reference of the same forward (tolerance check for
    the bf16 one-hot gather contractions inside the kernels)."""
    p = {k: np.asarray(v, np.float64) for k, v in p.items()}
    q_rel, edges, nodes, old_idx = (aux['q_rel'], aux['edges'], aux['nodes'],
                                    aux['old_idx'])
    S_out = len(nodes)
    n, H, A, R = len(q_rel), HIDDEN, ATTN, R_TOT

    def ln_relu(y):
        mu = y.mean(-1, keepdims=True)
        var = ((y - mu) ** 2).mean(-1, keepdims=True)
        return np.maximum((y - mu) / np.sqrt(var + LN_EPS), 0.0)

    query = p['rela_embed'][q_rel]
    query2 = p['rela_embed2'][q_rel]
    layer_input = np.ones((n, H))
    wt, bt = p['l1_rel_trans_w'], p['l1_rel_trans_b']
    relation = (query @ wt[:H])[:, None, :] + \
               (p['l1_rel_embed'] @ wt[H:] + bt)[None, :, :]        # (n, R, H)
    msg = layer_input[edges[:, 4]] * relation[edges[:, 0], edges[:, 2]]
    agg = np.zeros((S_out, H))
    np.add.at(agg, edges[:, 5], msg)
    hidden1 = ln_relu(agg @ p['l1_W_h'])
    np.add.at(hidden1, old_idx, layer_input)                        # residual

    lo = np.zeros((n, N_ENT, H))
    lo[nodes[:, 0], nodes[:, 1]] = hidden1
    wt2, bt2 = p['l2_rel_trans_w'], p['l2_rel_trans_b']
    scores = np.zeros((n, N_ENT))
    for b in range(n):
        h1 = np.maximum(np.concatenate(
            [lo[b], np.tile(query[b], (N_ENT, 1))], 1) @ p['bridge_w1'], 0.0)
        li2 = h1 @ p['bridge_w2']
        rel_full = (np.tile(query2[b], (R, 1)) @ wt2[:A]
                    + p['l2_rel_embed'] @ wt2[A:] + bt2)
        msg2 = li2[KG[:, 0]] * rel_full[KG[:, 1]]
        agg2 = np.zeros((N_ENT, A))
        np.add.at(agg2, KG[:, 2], msg2)
        li2b = ln_relu(agg2 @ p['l2_W_h']) + li2
        fh = np.maximum(np.concatenate(
            [li2b, np.tile(query2[b], (N_ENT, 1))], 1) @ p['final_w1']
            + p['final_b1'], 0.0)
        scores[b] = fh @ p['final_w2'][:, 0] + p['final_b2'][0]
    return scores


# ------------------------------------ main ------------------------------------
if __name__ == "__main__":
    key = jax.random.PRNGKey(0)
    params = init_params(key)
    KG, M_sub = build_kg(seed=0)
    # batch of 2 query triples (h, r, t)
    triples = [(3, 1, 7), (10, 2, 4)]

    scores, aux = gnn_model_forward(params, triples, KG, M_sub, return_aux=True)
    scores = jax.block_until_ready(scores)
    assert scores.shape == (len(triples), N_ENT)
    assert bool(jnp.all(jnp.isfinite(scores)))

    # tolerance-asserted float reference (bf16 is only used for the one-hot
    # gather contractions; generous bound still catches any indexing bug).
    ref = reference_forward(params, aux, KG)
    err = float(np.max(np.abs(np.asarray(scores, np.float64) - ref)))
    assert err < 0.15, f"kernel deviates from f64 reference: max abs err = {err}"
    print("KERNEL_OK")
</pallas_src>

<mosaic_0001>
module attributes {stable_mosaic.version = 11 : i64} {
  func.func @kernel(%arg0: memref<8x32xf32, #tpu.memory_space<vmem>>, %arg1: memref<10x32xf32, #tpu.memory_space<vmem>>, %arg2: memref<64x32xf32, #tpu.memory_space<vmem>>, %arg3: memref<1x32xf32, #tpu.memory_space<vmem>>, %arg4: memref<32x32xf32, #tpu.memory_space<vmem>>, %arg5: memref<2x32xf32, #tpu.memory_space<vmem>>, %arg6: memref<128x8xi32, #tpu.memory_space<vmem>>, %arg7: memref<1x128xi32, #tpu.memory_space<vmem>>, %arg8: memref<16x32xf32, #tpu.memory_space<vmem>>, %arg9: memref<16x32xf32, #tpu.memory_space<vmem>>) attributes {dimension_semantics = [], scalar_prefetch = 0 : i64, scratch_operands = 0 : i64, tpu.core_type = #tpu.core_type<tc>} {
    %c0 = arith.constant 0 : index
    %c0_0 = arith.constant 0 : index
    %0 = vector.load %arg0[%c0, %c0_0] : memref<8x32xf32, #tpu.memory_space<vmem>>, vector<8x32xf32>
    %c0_1 = arith.constant 0 : index
    %c0_2 = arith.constant 0 : index
    %1 = vector.load %arg2[%c0_1, %c0_2] : memref<64x32xf32, #tpu.memory_space<vmem>>, vector<32x32xf32>
    %cst = arith.constant dense<0.000000e+00> : vector<8x32xf32>
    %2 = tpu.matmul %0, %1, %cst {dimension_numbers = #tpu.dot_dimension_numbers<[1], [0], [0], [1], [0, 0, 1, 1], [], []>} : vector<8x32xf32>, vector<32x32xf32>, vector<8x32xf32> -> vector<8x32xf32>
    %c0_3 = arith.constant 0 : index
    %c0_4 = arith.constant 0 : index
    %3 = vector.load %arg1[%c0_3, %c0_4] : memref<10x32xf32, #tpu.memory_space<vmem>>, vector<10x32xf32>
    %c32 = arith.constant 32 : index
    %c0_5 = arith.constant 0 : index
    %4 = vector.load %arg2[%c32, %c0_5] : memref<64x32xf32, #tpu.memory_space<vmem>>, vector<32x32xf32>
    %cst_6 = arith.constant dense<0.000000e+00> : vector<10x32xf32>
    %5 = tpu.matmul %3, %4, %cst_6 {dimension_numbers = #tpu.dot_dimension_numbers<[1], [0], [0], [1], [0, 0, 1, 1], [], []>} : vector<10x32xf32>, vector<32x32xf32>, vector<10x32xf32> -> vector<10x32xf32>
    %c0_7 = arith.constant 0 : index
    %c0_8 = arith.constant 0 : index
    %6 = vector.load %arg3[%c0_7, %c0_8] : memref<1x32xf32, #tpu.memory_space<vmem>>, vector<1x32xf32>
    %7 = vector.broadcast %6 : vector<1x32xf32> to vector<10x32xf32>
    %8 = arith.addf %5, %7 : vector<10x32xf32>
    %9 = tpu.concatenate %2, %8 in 0 : vector<8x32xf32>, vector<10x32xf32> -> vector<18x32xf32>
    %c0_9 = arith.constant 0 : index
    %c0_10 = arith.constant 0 : index
    %10 = vector.load %arg6[%c0_9, %c0_10] : memref<128x8xi32, #tpu.memory_space<vmem>>, vector<128x8xi32>
    %11 = vector.extract_strided_slice %10 {offsets = [0, 0], sizes = [128, 1], strides = [1, 1]} : vector<128x8xi32> to vector<128x1xi32>
    %12 = vector.extract_strided_slice %10 {offsets = [0, 1], sizes = [128, 1], strides = [1, 1]} : vector<128x8xi32> to vector<128x1xi32>
    %13 = vector.extract_strided_slice %10 {offsets = [0, 2], sizes = [128, 1], strides = [1, 1]} : vector<128x8xi32> to vector<128x1xi32>
    %14 = tpu.iota {dimensions = array<i32: 1>} : vector<128x18xi32>
    %15 = vector.broadcast %11 : vector<128x1xi32> to vector<128x18xi32>
    %16 = arith.cmpi eq, %14, %15 : vector<128x18xi32>
    %c8_i32 = arith.constant 8 : i32
    %17 = vector.broadcast %c8_i32 : i32 to vector<128x1xi32>
    %18 = arith.addi %12, %17 : vector<128x1xi32>
    %19 = vector.broadcast %18 : vector<128x1xi32> to vector<128x18xi32>
    %20 = arith.cmpi eq, %14, %19 : vector<128x18xi32>
    %21 = arith.ori %16, %20 : vector<128x18xi1>
    %22 = arith.extui %21 : vector<128x18xi1> to vector<128x18xi32>
    %23 = arith.sitofp %22 : vector<128x18xi32> to vector<128x18xf32>
    %24 = arith.truncf %23 : vector<128x18xf32> to vector<128x18xbf16>
    %25 = arith.truncf %9 : vector<18x32xf32> to vector<18x32xbf16>
    %cst_11 = arith.constant dense<0.000000e+00> : vector<128x32xf32>
    %26 = tpu.matmul %24, %25, %cst_11 {dimension_numbers = #tpu.dot_dimension_numbers<[1], [0], [0], [1], [0, 0, 1, 1], [], []>} : vector<128x18xbf16>, vector<18x32xbf16>, vector<128x32xf32> -> vector<128x32xf32>
    %27 = tpu.iota {dimensions = array<i32: 1>} : vector<128x2xi32>
    %28 = vector.broadcast %13 : vector<128x1xi32> to vector<128x2xi32>
    %29 = arith.cmpi eq, %27, %28 : vector<128x2xi32>
    %30 = arith.extui %29 : vector<128x2xi1> to vector<128x2xi32>
    %31 = arith.sitofp %30 : vector<128x2xi32> to vector<128x2xf32>
    %c0_12 = arith.constant 0 : index
    %c0_13 = arith.constant 0 : index
    %32 = vector.load %arg5[%c0_12, %c0_13] : memref<2x32xf32, #tpu.memory_space<vmem>>, vector<2x32xf32>
    %33 = arith.truncf %31 : vector<128x2xf32> to vector<128x2xbf16>
    %34 = arith.truncf %32 : vector<2x32xf32> to vector<2x32xbf16>
    %cst_14 = arith.constant dense<0.000000e+00> : vector<128x32xf32>
    %35 = tpu.matmul %33, %34, %cst_14 {dimension_numbers = #tpu.dot_dimension_numbers<[1], [0], [0], [1], [0, 0, 1, 1], [], []>} : vector<128x2xbf16>, vector<2x32xbf16>, vector<128x32xf32> -> vector<128x32xf32>
    %36 = arith.mulf %35, %26 : vector<128x32xf32>
    %37 = tpu.iota {dimensions = array<i32: 0>} : vector<16x128xi32>
    %c0_15 = arith.constant 0 : index
    %c0_16 = arith.constant 0 : index
    %38 = vector.load %arg7[%c0_15, %c0_16] : memref<1x128xi32, #tpu.memory_space<vmem>>, vector<1x128xi32>
    %39 = vector.broadcast %38 : vector<1x128xi32> to vector<16x128xi32>
    %40 = arith.cmpi eq, %37, %39 : vector<16x128xi32>
    %41 = arith.extui %40 : vector<16x128xi1> to vector<16x128xi32>
    %42 = arith.sitofp %41 : vector<16x128xi32> to vector<16x128xf32>
    %cst_17 = arith.constant dense<0.000000e+00> : vector<16x32xf32>
    %43 = tpu.matmul %42, %36, %cst_17 {dimension_numbers = #tpu.dot_dimension_numbers<[1], [0], [0], [1], [0, 0, 1, 1], [], []>} : vector<16x128xf32>, vector<128x32xf32>, vector<16x32xf32> -> vector<16x32xf32>
    %c0_18 = arith.constant 0 : index
    %c0_19 = arith.constant 0 : index
    %44 = vector.load %arg4[%c0_18, %c0_19] : memref<32x32xf32, #tpu.memory_space<vmem>>, vector<32x32xf32>
    %cst_20 = arith.constant dense<0.000000e+00> : vector<16x32xf32>
    %45 = tpu.matmul %43, %44, %cst_20 {dimension_numbers = #tpu.dot_dimension_numbers<[1], [0], [0], [1], [0, 0, 1, 1], [], []>} : vector<16x32xf32>, vector<32x32xf32>, vector<16x32xf32> -> vector<16x32xf32>
    %cst_21 = arith.constant dense<0.000000e+00> : vector<16xf32>
    %46 = vector.multi_reduction <add>, %45, %cst_21 [1] : vector<16x32xf32> to vector<16xf32>
    %47 = vector.shape_cast %46 : vector<16xf32> to vector<16x1xf32>
    %cst_22 = arith.constant 3.200000e+01 : f32
    %48 = vector.broadcast %cst_22 : f32 to vector<16x1xf32>
    %49 = arith.divf %47, %48 : vector<16x1xf32>
    %50 = arith.mulf %45, %45 : vector<16x32xf32>
    %cst_23 = arith.constant dense<0.000000e+00> : vector<16xf32>
    %51 = vector.multi_reduction <add>, %50, %cst_23 [1] : vector<16x32xf32> to vector<16xf32>
    %52 = vector.shape_cast %51 : vector<16xf32> to vector<16x1xf32>
    %cst_24 = arith.constant 3.200000e+01 : f32
    %53 = vector.broadcast %cst_24 : f32 to vector<16x1xf32>
    %54 = arith.divf %52, %53 : vector<16x1xf32>
    %55 = arith.mulf %49, %49 : vector<16x1xf32>
    %56 = arith.subf %54, %55 : vector<16x1xf32>
    %cst_25 = arith.constant 0.000000e+00 : f32
    %57 = vector.broadcast %cst_25 : f32 to vector<16x1xf32>
    %58 = arith.maximumf %56, %57 : vector<16x1xf32>
    %59 = vector.broadcast %49 : vector<16x1xf32> to vector<16x32xf32>
    %60 = arith.subf %45, %59 : vector<16x32xf32>
    %cst_26 = arith.constant 9.99999974E-6 : f32
    %61 = vector.broadcast %cst_26 : f32 to vector<16x1xf32>
    %62 = arith.addf %58, %61 : vector<16x1xf32>
    %63 = math.rsqrt %62 : vector<16x1xf32>
    %64 = vector.broadcast %63 : vector<16x1xf32> to vector<16x32xf32>
    %65 = arith.mulf %60, %64 : vector<16x32xf32>
    %cst_27 = arith.constant 0.000000e+00 : f32
    %66 = vector.broadcast %cst_27 : f32 to vector<16x32xf32>
    %67 = arith.maximumf %65, %66 : vector<16x32xf32>
    %c0_28 = arith.constant 0 : index
    %c0_29 = arith.constant 0 : index
    %68 = vector.load %arg8[%c0_28, %c0_29] : memref<16x32xf32, #tpu.memory_space<vmem>>, vector<16x32xf32>
    %69 = arith.addf %67, %68 : vector<16x32xf32>
    %c0_30 = arith.constant 0 : index
    %c0_31 = arith.constant 0 : index
    %70 = vector.load %arg9[%c0_30, %c0_31] : memref<16x32xf32, #tpu.memory_space<vmem>>, vector<16x32xf32>
    tpu.vector_store %arg9[%c0_30, %c0_31], %69 {strides = array<i32>} : memref<16x32xf32, #tpu.memory_space<vmem>>, vector<16x32xf32>,
    return
  }
}

module attributes {stable_mosaic.version = 11 : i64} {
  func.func @kernel(%arg0: i32, %arg1: memref<16x32xf32, #tpu.memory_space<vmem>>, %arg2: memref<8x16xi32, #tpu.memory_space<vmem>>, %arg3: memref<1x1x32xf32, #tpu.memory_space<vmem>>, %arg4: memref<1x1x32xf32, #tpu.memory_space<vmem>>, %arg5: memref<128x8xi32, #tpu.memory_space<vmem>>, %arg6: memref<1x128xi32, #tpu.memory_space<vmem>>, %arg7: memref<64x32xf32, #tpu.memory_space<vmem>>, %arg8: memref<32x32xf32, #tpu.memory_space<vmem>>, %arg9: memref<10x32xf32, #tpu.memory_space<vmem>>, %arg10: memref<64x32xf32, #tpu.memory_space<vmem>>, %arg11: memref<1x32xf32, #tpu.memory_space<vmem>>, %arg12: memref<32x32xf32, #tpu.memory_space<vmem>>, %arg13: memref<64x32xf32, #tpu.memory_space<vmem>>, %arg14: memref<1x32xf32, #tpu.memory_space<vmem>>, %arg15: memref<1x32xf32, #tpu.memory_space<vmem>>, %arg16: memref<1x1xf32, #tpu.memory_space<vmem>>, %arg17: memref<1x1x32xf32, #tpu.memory_space<vmem>>) attributes {dimension_semantics = [#tpu.dimension_semantics<parallel>], iteration_bounds = array<i64: 2>, scalar_prefetch = 0 : i64, scratch_operands = 0 : i64, tpu.core_type = #tpu.core_type<tc>, window_params = [{pipeline_mode = #tpu.pipeline_mode<synchronous>, transform_indices = @transform_0, window_bounds = array<i64: 16, 32>}, {pipeline_mode = #tpu.pipeline_mode<synchronous>, transform_indices = @transform_1, window_bounds = array<i64: 8, 16>}, {transform_indices = @transform_2, window_bounds = array<i64: 1, 1, 32>}, {transform_indices = @transform_3, window_bounds = array<i64: 1, 1, 32>}, {pipeline_mode = #tpu.pipeline_mode<synchronous>, transform_indices = @transform_4, window_bounds = array<i64: 128, 8>}, {pipeline_mode = #tpu.pipeline_mode<synchronous>, transform_indices = @transform_5, window_bounds = array<i64: 1, 128>}, {pipeline_mode = #tpu.pipeline_mode<synchronous>, transform_indices = @transform_6, window_bounds = array<i64: 64, 32>}, {pipeline_mode = #tpu.pipeline_mode<synchronous>, transform_indices = @transform_7, window_bounds = array<i64: 32, 32>}, {pipeline_mode = #tpu.pipeline_mode<synchronous>, transform_indices = @transform_8, window_bounds = array<i64: 10, 32>}, {pipeline_mode = #tpu.pipeline_mode<synchronous>, transform_indices = @transform_9, window_bounds = array<i64: 64, 32>}, {pipeline_mode = #tpu.pipeline_mode<synchronous>, transform_indices = @transform_10, window_bounds = array<i64: 1, 32>}, {pipeline_mode = #tpu.pipeline_mode<synchronous>, transform_indices = @transform_11, window_bounds = array<i64: 32, 32>}, {pipeline_mode = #tpu.pipeline_mode<synchronous>, transform_indices = @transform_12, window_bounds = array<i64: 64, 32>}, {pipeline_mode = #tpu.pipeline_mode<synchronous>, transform_indices = @transform_13, window_bounds = array<i64: 1, 32>}, {pipeline_mode = #tpu.pipeline_mode<synchronous>, transform_indices = @transform_14, window_bounds = array<i64: 1, 32>}, {pipeline_mode = #tpu.pipeline_mode<synchronous>, transform_indices = @transform_15, window_bounds = array<i64: 1, 1>}, {transform_indices = @transform_16, window_bounds = array<i64: 1, 1, 32>}]} {
    %c0 = arith.constant 0 : index
    %c0_0 = arith.constant 0 : index
    %c0_1 = arith.constant 0 : index
    %0 = vector.load %arg3[%c0, %c0_0, %c0_1] : memref<1x1x32xf32, #tpu.memory_space<vmem>>, vector<1x1x32xf32>
    %1 = vector.shape_cast %0 : vector<1x1x32xf32> to vector<1x32xf32>
    %c0_2 = arith.constant 0 : index
    %c0_3 = arith.constant 0 : index
    %c0_4 = arith.constant 0 : index
    %2 = vector.load %arg4[%c0_2, %c0_3, %c0_4] : memref<1x1x32xf32, #tpu.memory_space<vmem>>, vector<1x1x32xf32>
    %3 = vector.shape_cast %2 : vector<1x1x32xf32> to vector<1x32xf32>
    %c0_5 = arith.constant 0 : index
    %c0_6 = arith.constant 0 : index
    %4 = vector.load %arg2[%c0_5, %c0_6] : memref<8x16xi32, #tpu.memory_space<vmem>>, vector<1x16xi32>
    %c1 = arith.constant 1 : index
    %c0_7 = arith.constant 0 : index
    %5 = vector.load %arg2[%c1, %c0_7] : memref<8x16xi32, #tpu.memory_space<vmem>>, vector<1x16xi32>
    %6 = tpu.iota {dimensions = array<i32: 0>} : vector<32x16xi32>
    %7 = vector.broadcast %arg0 : i32 to vector<1x16xi32>
    %8 = arith.cmpi eq, %4, %7 : vector<1x16xi32>
    %9 = vector.broadcast %5 : vector<1x16xi32> to vector<32x16xi32>
    %10 = arith.cmpi eq, %9, %6 : vector<32x16xi32>
    %11 = vector.broadcast %8 : vector<1x16xi1> to vector<32x16xi1>
    %12 = arith.andi %11, %10 : vector<32x16xi1>
    %13 = arith.extui %12 : vector<32x16xi1> to vector<32x16xi32>
    %14 = arith.sitofp %13 : vector<32x16xi32> to vector<32x16xf32>
    %c0_8 = arith.constant 0 : index
    %c0_9 = arith.constant 0 : index
    %15 = vector.load %arg1[%c0_8, %c0_9] : memref<16x32xf32, #tpu.memory_space<vmem>>, vector<16x32xf32>
    %16 = arith.truncf %14 : vector<32x16xf32> to vector<32x16xbf16>
    %17 = arith.truncf %15 : vector<16x32xf32> to vector<16x32xbf16>
    %cst = arith.constant dense<0.000000e+00> : vector<32x32xf32>
    %18 = tpu.matmul %16, %17, %cst {dimension_numbers = #tpu.dot_dimension_numbers<[1], [0], [0], [1], [0, 0, 1, 1], [], []>} : vector<32x16xbf16>, vector<16x32xbf16>, vector<32x32xf32> -> vector<32x32xf32>
    %19 = vector.shape_cast %1 : vector<1x32xf32> to vector<1x32xf32>
    %20 = vector.broadcast %19 : vector<1x32xf32> to vector<32x32xf32>
    %21 = tpu.concatenate %18, %20 in 1 : vector<32x32xf32>, vector<32x32xf32> -> vector<32x64xf32>
    %c0_10 = arith.constant 0 : index
    %c0_11 = arith.constant 0 : index
    %22 = vector.load %arg7[%c0_10, %c0_11] : memref<64x32xf32, #tpu.memory_space<vmem>>, vector<64x32xf32>
    %cst_12 = arith.constant dense<0.000000e+00> : vector<32x32xf32>
    %23 = tpu.matmul %21, %22, %cst_12 {dimension_numbers = #tpu.dot_dimension_numbers<[1], [0], [0], [1], [0, 0, 1, 1], [], []>} : vector<32x64xf32>, vector<64x32xf32>, vector<32x32xf32> -> vector<32x32xf32>
    %cst_13 = arith.constant 0.000000e+00 : f32
    %24 = vector.broadcast %cst_13 : f32 to vector<32x32xf32>
    %25 = arith.maximumf %23, %24 : vector<32x32xf32>
    %c0_14 = arith.constant 0 : index
    %c0_15 = arith.constant 0 : index
    %26 = vector.load %arg8[%c0_14, %c0_15] : memref<32x32xf32, #tpu.memory_space<vmem>>, vector<32x32xf32>
    %cst_16 = arith.constant dense<0.000000e+00> : vector<32x32xf32>
    %27 = tpu.matmul %25, %26, %cst_16 {dimension_numbers = #tpu.dot_dimension_numbers<[1], [0], [0], [1], [0, 0, 1, 1], [], []>} : vector<32x32xf32>, vector<32x32xf32>, vector<32x32xf32> -> vector<32x32xf32>
    %28 = vector.shape_cast %3 : vector<1x32xf32> to vector<1x32xf32>
    %29 = vector.broadcast %28 : vector<1x32xf32> to vector<10x32xf32>
    %c0_17 = arith.constant 0 : index
    %c0_18 = arith.constant 0 : index
    %30 = vector.load %arg9[%c0_17, %c0_18] : memref<10x32xf32, #tpu.memory_space<vmem>>, vector<10x32xf32>
    %31 = tpu.concatenate %29, %30 in 1 : vector<10x32xf32>, vector<10x32xf32> -> vector<10x64xf32>
    %c0_19 = arith.constant 0 : index
    %c0_20 = arith.constant 0 : index
    %32 = vector.load %arg10[%c0_19, %c0_20] : memref<64x32xf32, #tpu.memory_space<vmem>>, vector<64x32xf32>
    %cst_21 = arith.constant dense<0.000000e+00> : vector<10x32xf32>
    %33 = tpu.matmul %31, %32, %cst_21 {dimension_numbers = #tpu.dot_dimension_numbers<[1], [0], [0], [1], [0, 0, 1, 1], [], []>} : vector<10x64xf32>, vector<64x32xf32>, vector<10x32xf32> -> vector<10x32xf32>
    %c0_22 = arith.constant 0 : index
    %c0_23 = arith.constant 0 : index
    %34 = vector.load %arg11[%c0_22, %c0_23] : memref<1x32xf32, #tpu.memory_space<vmem>>, vector<1x32xf32>
    %35 = vector.broadcast %34 : vector<1x32xf32> to vector<10x32xf32>
    %36 = arith.addf %33, %35 : vector<10x32xf32>
    %c0_24 = arith.constant 0 : index
    %c0_25 = arith.constant 0 : index
    %37 = vector.load %arg5[%c0_24, %c0_25] : memref<128x8xi32, #tpu.memory_space<vmem>>, vector<128x1xi32>
    %c0_26 = arith.constant 0 : index
    %c1_27 = arith.constant 1 : index
    %38 = vector.load %arg5[%c0_26, %c1_27] : memref<128x8xi32, #tpu.memory_space<vmem>>, vector<128x1xi32>
    %39 = tpu.iota {dimensions = array<i32: 1>} : vector<128x32xi32>
    %40 = vector.broadcast %37 : vector<128x1xi32> to vector<128x32xi32>
    %41 = arith.cmpi eq, %39, %40 : vector<128x32xi32>
    %42 = arith.extui %41 : vector<128x32xi1> to vector<128x32xi32>
    %43 = arith.sitofp %42 : vector<128x32xi32> to vector<128x32xf32>
    %44 = arith.truncf %43 : vector<128x32xf32> to vector<128x32xbf16>
    %45 = arith.truncf %27 : vector<32x32xf32> to vector<32x32xbf16>
    %cst_28 = arith.constant dense<0.000000e+00> : vector<128x32xf32>
    %46 = tpu.matmul %44, %45, %cst_28 {dimension_numbers = #tpu.dot_dimension_numbers<[1], [0], [0], [1], [0, 0, 1, 1], [], []>} : vector<128x32xbf16>, vector<32x32xbf16>, vector<128x32xf32> -> vector<128x32xf32>
    %47 = tpu.iota {dimensions = array<i32: 1>} : vector<128x10xi32>
    %48 = vector.broadcast %38 : vector<128x1xi32> to vector<128x10xi32>
    %49 = arith.cmpi eq, %47, %48 : vector<128x10xi32>
    %50 = arith.extui %49 : vector<128x10xi1> to vector<128x10xi32>
    %51 = arith.sitofp %50 : vector<128x10xi32> to vector<128x10xf32>
    %52 = arith.truncf %51 : vector<128x10xf32> to vector<128x10xbf16>
    %53 = arith.truncf %36 : vector<10x32xf32> to vector<10x32xbf16>
    %cst_29 = arith.constant dense<0.000000e+00> : vector<128x32xf32>
    %54 = tpu.matmul %52, %53, %cst_29 {dimension_numbers = #tpu.dot_dimension_numbers<[1], [0], [0], [1], [0, 0, 1, 1], [], []>} : vector<128x10xbf16>, vector<10x32xbf16>, vector<128x32xf32> -> vector<128x32xf32>
    %55 = arith.mulf %46, %54 : vector<128x32xf32>
    %56 = tpu.iota {dimensions = array<i32: 0>} : vector<32x128xi32>
    %c0_30 = arith.constant 0 : index
    %c0_31 = arith.constant 0 : index
    %57 = vector.load %arg6[%c0_30, %c0_31] : memref<1x128xi32, #tpu.memory_space<vmem>>, vector<1x128xi32>
    %58 = vector.broadcast %57 : vector<1x128xi32> to vector<32x128xi32>
    %59 = arith.cmpi eq, %56, %58 : vector<32x128xi32>
    %60 = arith.extui %59 : vector<32x128xi1> to vector<32x128xi32>
    %61 = arith.sitofp %60 : vector<32x128xi32> to vector<32x128xf32>
    %cst_32 = arith.constant dense<0.000000e+00> : vector<32x32xf32>
    %62 = tpu.matmul %61, %55, %cst_32 {dimension_numbers = #tpu.dot_dimension_numbers<[1], [0], [0], [1], [0, 0, 1, 1], [], []>} : vector<32x128xf32>, vector<128x32xf32>, vector<32x32xf32> -> vector<32x32xf32>
    %c0_33 = arith.constant 0 : index
    %c0_34 = arith.constant 0 : index
    %63 = vector.load %arg12[%c0_33, %c0_34] : memref<32x32xf32, #tpu.memory_space<vmem>>, vector<32x32xf32>
    %cst_35 = arith.constant dense<0.000000e+00> : vector<32x32xf32>
    %64 = tpu.matmul %62, %63, %cst_35 {dimension_numbers = #tpu.dot_dimension_numbers<[1], [0], [0], [1], [0, 0, 1, 1], [], []>} : vector<32x32xf32>, vector<32x32xf32>, vector<32x32xf32> -> vector<32x32xf32>
    %cst_36 = arith.constant dense<0.000000e+00> : vector<32xf32>
    %65 = vector.multi_reduction <add>, %64, %cst_36 [1] : vector<32x32xf32> to vector<32xf32>
    %66 = vector.shape_cast %65 : vector<32xf32> to vector<32x1xf32>
    %cst_37 = arith.constant 3.200000e+01 : f32
    %67 = vector.broadcast %cst_37 : f32 to vector<32x1xf32>
    %68 = arith.divf %66, %67 : vector<32x1xf32>
    %69 = arith.mulf %64, %64 : vector<32x32xf32>
    %cst_38 = arith.constant dense<0.000000e+00> : vector<32xf32>
    %70 = vector.multi_reduction <add>, %69, %cst_38 [1] : vector<32x32xf32> to vector<32xf32>
    %71 = vector.shape_cast %70 : vector<32xf32> to vector<32x1xf32>
    %cst_39 = arith.constant 3.200000e+01 : f32
    %72 = vector.broadcast %cst_39 : f32 to vector<32x1xf32>
    %73 = arith.divf %71, %72 : vector<32x1xf32>
    %74 = arith.mulf %68, %68 : vector<32x1xf32>
    %75 = arith.subf %73, %74 : vector<32x1xf32>
    %cst_40 = arith.constant 0.000000e+00 : f32
    %76 = vector.broadcast %cst_40 : f32 to vector<32x1xf32>
    %77 = arith.maximumf %75, %76 : vector<32x1xf32>
    %78 = vector.broadcast %68 : vector<32x1xf32> to vector<32x32xf32>
    %79 = arith.subf %64, %78 : vector<32x32xf32>
    %cst_41 = arith.constant 9.99999974E-6 : f32
    %80 = vector.broadcast %cst_41 : f32 to vector<32x1xf32>
    %81 = arith.addf %77, %80 : vector<32x1xf32>
    %82 = math.rsqrt %81 : vector<32x1xf32>
    %83 = vector.broadcast %82 : vector<32x1xf32> to vector<32x32xf32>
    %84 = arith.mulf %79, %83 : vector<32x32xf32>
    %cst_42 = arith.constant 0.000000e+00 : f32
    %85 = vector.broadcast %cst_42 : f32 to vector<32x32xf32>
    %86 = arith.maximumf %84, %85 : vector<32x32xf32>
    %87 = arith.addf %86, %27 : vector<32x32xf32>
    %88 = vector.shape_cast %3 : vector<1x32xf32> to vector<1x32xf32>
    %89 = vector.broadcast %88 : vector<1x32xf32> to vector<32x32xf32>
    %90 = tpu.concatenate %87, %89 in 1 : vector<32x32xf32>, vector<32x32xf32> -> vector<32x64xf32>
    %c0_43 = arith.constant 0 : index
    %c0_44 = arith.constant 0 : index
    %91 = vector.load %arg13[%c0_43, %c0_44] : memref<64x32xf32, #tpu.memory_space<vmem>>, vector<64x32xf32>
    %cst_45 = arith.constant dense<0.000000e+00> : vector<32x32xf32>
    %92 = tpu.matmul %90, %91, %cst_45 {dimension_numbers = #tpu.dot_dimension_numbers<[1], [0], [0], [1], [0, 0, 1, 1], [], []>} : vector<32x64xf32>, vector<64x32xf32>, vector<32x32xf32> -> vector<32x32xf32>
    %c0_46 = arith.constant 0 : index
    %c0_47 = arith.constant 0 : index
    %93 = vector.load %arg14[%c0_46, %c0_47] : memref<1x32xf32, #tpu.memory_space<vmem>>, vector<1x32xf32>
    %94 = vector.broadcast %93 : vector<1x32xf32> to vector<32x32xf32>
    %95 = arith.addf %92, %94 : vector<32x32xf32>
    %cst_48 = arith.constant 0.000000e+00 : f32
    %96 = vector.broadcast %cst_48 : f32 to vector<32x32xf32>
    %97 = arith.maximumf %95, %96 : vector<32x32xf32>
    %c0_49 = arith.constant 0 : index
    %c0_50 = arith.constant 0 : index
    %98 = vector.load %arg15[%c0_49, %c0_50] : memref<1x32xf32, #tpu.memory_space<vmem>>, vector<1x32xf32>
    %cst_51 = arith.constant dense<0.000000e+00> : vector<1x32xf32>
    %99 = tpu.matmul %98, %97, %cst_51 {dimension_numbers = #tpu.dot_dimension_numbers<[1], [1], [0], [0], [0, 0, 1, 0], [], []>} : vector<1x32xf32>, vector<32x32xf32>, vector<1x32xf32> -> vector<1x32xf32>
    %c0_52 = arith.constant 0 : index
    %c0_53 = arith.constant 0 : index
    %100 = vector.load %arg16[%c0_52, %c0_53] : memref<1x1xf32, #tpu.memory_space<vmem>>, vector<1x1xf32>
    %101 = vector.broadcast %100 : vector<1x1xf32> to vector<1x32xf32>
    %102 = arith.addf %99, %101 : vector<1x32xf32>
    %c0_54 = arith.constant 0 : index
    %c0_55 = arith.constant 0 : index
    %c0_56 = arith.constant 0 : index
    %103 = vector.load %arg17[%c0_54, %c0_55, %c0_56] : memref<1x1x32xf32, #tpu.memory_space<vmem>>, vector<1x1x32xf32>
    %104 = vector.shape_cast %103 : vector<1x1x32xf32> to vector<1x32xf32>
    %105 = vector.shape_cast %102 : vector<1x32xf32> to vector<1x1x32xf32>
    tpu.vector_store %arg17[%c0_54, %c0_55, %c0_56], %105 {strides = array<i32>} : memref<1x1x32xf32, #tpu.memory_space<vmem>>, vector<1x1x32xf32>,
    return
  }
  func.func @transform_0(%arg0: i32) -> (i32, i32) {
    %c0_i32 = arith.constant 0 : i32
    %c0_i32_0 = arith.constant 0 : i32
    %c0_i32_1 = arith.constant 0 : i32
    return %c0_i32, %c0_i32_0 : i32, i32
  }
  func.func @transform_1(%arg0: i32) -> (i32, i32) {
    %c0_i32 = arith.constant 0 : i32
    %c0_i32_0 = arith.constant 0 : i32
    %c0_i32_1 = arith.constant 0 : i32
    return %c0_i32, %c0_i32_0 : i32, i32
  }
  func.func @transform_2(%arg0: i32) -> (i32, i32, i32) {
    %c0_i32 = arith.constant 0 : i32
    %c0_i32_0 = arith.constant 0 : i32
    %c0_i32_1 = arith.constant 0 : i32
    return %arg0, %c0_i32, %c0_i32_0 : i32, i32, i32
  }
  func.func @transform_3(%arg0: i32) -> (i32, i32, i32) {
    %c0_i32 = arith.constant 0 : i32
    %c0_i32_0 = arith.constant 0 : i32
    %c0_i32_1 = arith.constant 0 : i32
    return %arg0, %c0_i32, %c0_i32_0 : i32, i32, i32
  }
  func.func @transform_4(%arg0: i32) -> (i32, i32) {
    %c0_i32 = arith.constant 0 : i32
    %c0_i32_0 = arith.constant 0 : i32
    %c0_i32_1 = arith.constant 0 : i32
    return %c0_i32, %c0_i32_0 : i32, i32
  }
  func.func @transform_5(%arg0: i32) -> (i32, i32) {
    %c0_i32 = arith.constant 0 : i32
    %c0_i32_0 = arith.constant 0 : i32
    %c0_i32_1 = arith.constant 0 : i32
    return %c0_i32, %c0_i32_0 : i32, i32
  }
  func.func @transform_6(%arg0: i32) -> (i32, i32) {
    %c0_i32 = arith.constant 0 : i32
    %c0_i32_0 = arith.constant 0 : i32
    %c0_i32_1 = arith.constant 0 : i32
    return %c0_i32, %c0_i32_0 : i32, i32
  }
  func.func @transform_7(%arg0: i32) -> (i32, i32) {
    %c0_i32 = arith.constant 0 : i32
    %c0_i32_0 = arith.constant 0 : i32
    %c0_i32_1 = arith.constant 0 : i32
    return %c0_i32, %c0_i32_0 : i32, i32
  }
  func.func @transform_8(%arg0: i32) -> (i32, i32) {
    %c0_i32 = arith.constant 0 : i32
    %c0_i32_0 = arith.constant 0 : i32
    %c0_i32_1 = arith.constant 0 : i32
    return %c0_i32, %c0_i32_0 : i32, i32
  }
  func.func @transform_9(%arg0: i32) -> (i32, i32) {
    %c0_i32 = arith.constant 0 : i32
    %c0_i32_0 = arith.constant 0 : i32
    %c0_i32_1 = arith.constant 0 : i32
    return %c0_i32, %c0_i32_0 : i32, i32
  }
  func.func @transform_10(%arg0: i32) -> (i32, i32) {
    %c0_i32 = arith.constant 0 : i32
    %c0_i32_0 = arith.constant 0 : i32
    %c0_i32_1 = arith.constant 0 : i32
    return %c0_i32, %c0_i32_0 : i32, i32
  }
  func.func @transform_11(%arg0: i32) -> (i32, i32) {
    %c0_i32 = arith.constant 0 : i32
    %c0_i32_0 = arith.constant 0 : i32
    %c0_i32_1 = arith.constant 0 : i32
    return %c0_i32, %c0_i32_0 : i32, i32
  }
  func.func @transform_12(%arg0: i32) -> (i32, i32) {
    %c0_i32 = arith.constant 0 : i32
    %c0_i32_0 = arith.constant 0 : i32
    %c0_i32_1 = arith.constant 0 : i32
    return %c0_i32, %c0_i32_0 : i32, i32
  }
  func.func @transform_13(%arg0: i32) -> (i32, i32) {
    %c0_i32 = arith.constant 0 : i32
    %c0_i32_0 = arith.constant 0 : i32
    %c0_i32_1 = arith.constant 0 : i32
    return %c0_i32, %c0_i32_0 : i32, i32
  }
  func.func @transform_14(%arg0: i32) -> (i32, i32) {
    %c0_i32 = arith.constant 0 : i32
    %c0_i32_0 = arith.constant 0 : i32
    %c0_i32_1 = arith.constant 0 : i32
    return %c0_i32, %c0_i32_0 : i32, i32
  }
  func.func @transform_15(%arg0: i32) -> (i32, i32) {
    %c0_i32 = arith.constant 0 : i32
    %c0_i32_0 = arith.constant 0 : i32
    %c0_i32_1 = arith.constant 0 : i32
    return %c0_i32, %c0_i32_0 : i32, i32
  }
  func.func @transform_16(%arg0: i32) -> (i32, i32, i32) {
    %c0_i32 = arith.constant 0 : i32
    %c0_i32_0 = arith.constant 0 : i32
    %c0_i32_1 = arith.constant 0 : i32
    return %arg0, %c0_i32, %c0_i32_0 : i32, i32, i32
  }
}

</mosaic_0001>

<bundles_post_ra>
// kernel: device_forward.2
= control target key start
LH: loop header
LB: loop body
LE: loop exit
PB: predicated region body
PF: predicated region fallthrough
CT: control target
= control target key end

     0   :  { %v1327_v0 = vmov 2   ;;  %v1328_v2 = vmov 1   ;;  %v1329_v8 = vmov 0.0|0.0   ;;  %vm38_vm0 = vcmask 261120   ;;  %s1707_s6 = inlined_call_operand.vmem [shape: s32[128,8], index: 6, kind: input, shape index: {}]   ;;  %s1708_s2 = inlined_call_operand.vmem [shape: f32[64,32], index: 2, kind: input, shape index: {}]   ;;  %s1709_s1 = inlined_call_operand.vmem [shape: f32[10,32], index: 1, kind: input, shape index: {}]   ;;  %s1710_s0 = inlined_call_operand.vmem [shape: f32[8,32], index: 0, kind: input, shape index: {}]   ;;  %s1711_s5 = inlined_call_operand.vmem [shape: f32[2,32], index: 5, kind: input, shape index: {}]   ;;  %s1712_s3 = inlined_call_operand.vmem [shape: f32[1,32], index: 3, kind: input, shape index: {}]   ;;  %s1713_s7 = inlined_call_operand.vmem [shape: s32[1,128], index: 7, kind: input, shape index: {}]   ;;  %s1714_s4 = inlined_call_operand.vmem [shape: f32[32,32], index: 4, kind: input, shape index: {}]   ;;  %s1715_s8 = inlined_call_operand.vmem [shape: f32[16,32], index: 8, kind: input, shape index: {}]   ;;  %s1716_s9 = inlined_call_operand.vmem [shape: f32[16,32], index: 9, kind: output, shape index: {}]  }
   0x1   :  { %1304 = vset.pattern.permute.xlu0 %v1327_v0  ;;  %v207_v1 = vld [vmem:[%s1707_s6 + $0x8] sm:$0xff]  ;;  %1300 = vset.pattern.permute.xlu1 %v1328_v2  ;;  %v206_v3 = vld [vmem:[%s1707_s6] sm:$0xff]  ;;  %v116_v12 = vld [vmem:[%s1708_s2 + $0x30] sm:$0xff]  ;;  %vm1330_vm1 = vmmov 0   ;;  %v1331_v14 = vmov 0.0   ;;  %v1332_v27 = vmov 0   ;;  %v222_v60 = vlaneseq }
   0x2   :  { %v114_v4 = vld [vmem:[%s1708_s2 + $0x20] sm:$0xff]  ;;  %556 = vperm.xlu0 %1304, %v207_v1   ;;  %v288_v5 = vadd.s32 8, %v206_v3  ;;  %v115_v6 = vld [vmem:[%s1708_s2 + $0x28] sm:$0xff]  ;;  %1237 = vmatprep.subr.bf16.mxu0 %v1329_v8  ;;  %v117_v13 = vld [vmem:[%s1708_s2 + $0x38] sm:$0xff]  ;;  %v289_v15 = vadd.s32 8, %v207_v1  ;;  %vm451_vm2 = vcmask 1040384  }
   0x3   :  { %v1401_v7 = vld [vmem:[%s1707_s6 + $0x20] sm:$0xff]  ;;  %v1243_v10 = vpack.c.bf16 %v115_v6, %v114_v4  ;;  %v35_v11 = vld [vmem:[%s1708_s2 + $0x8] sm:$0xff]  ;;  %1139 = vmatprep.mubr.msk.f32.mxu0 %vm1330_vm1, %v1331_v14  ;;  %v1247_v17 = vpack.c.bf16 %v117_v13, %v116_v12  ;;  %v36_v19 = vld [vmem:[%s1708_s2 + $0x10] sm:$0xff]  ;;  %v1510_v63 = vand.u32 127, %v222_v60  ;;  %vm658_vm14 = vcmask 15360  }
   0x4   :  { %v34_v9 = vld [vmem:[%s1708_s2] sm:$0xff]  ;;  %305 = vperm.xlu1 %1300, %v288_v5   ;;  %v37_v20 = vld [vmem:[%s1708_s2 + $0x18] sm:$0xff]  ;;  %v113_v23 = vld [vmem:[%s1709_s1 + $0x8] sm:$0x3]  ;;  %v292_v35 = vadd.s32 8, %v1401_v7  ;;  %vm426_vm15 = vcmask 146432  }
   0x5   :  { %v1238_v16 = vpack.c.bf16 %v35_v11, %v34_v9  ;;  %v112_v18 = vld [vmem:[%s1709_s1] sm:$0xff]  ;;  %1244 = vmatprep.subr.bf16.mxu1 %v1243_v10  ;;  %v213_v21 = vld [vmem:[%s1707_s6 + $0x38] sm:$0xff]  ;;  %v1241_v22 = vpack.c.bf16 %v37_v20, %v36_v19  ;;  %v1439_v25 = vld [vmem:[%s1707_s6 + $0x48] sm:$0xff] }
   0x6   :  { %1150 = vmatprep.mubr.msk.f32.mxu1 %vm38_vm0, %v112_v18  ;;  %1246 = vmatpush3.bf16.msra.mxu1 %v1243_v10  ;;  %v209_v24 = vld [vmem:[%s1707_s6 + $0x18] sm:$0xff]  ;;  %v33_v26 = vld [vmem:[%s1710_s0] sm:$0xff]  ;;  %v208_v29 = vld [vmem:[%s1707_s6 + $0x10] sm:$0xff]  ;;  %v295_v40 = vadd.s32 8, %v213_v21  ;;  %v297_v49 = vadd.s32 8, %v1439_v25 }
   0x7   :  { %565 = vperm.xlu0 %1304, %v1401_v7   ;;  %1239 = vmatpush3.bf16.msra.mxu0 %v1238_v16  ;;  %v291_v28 = vadd.s32 8, %v209_v24  ;;  %v616_v30 = vld [vmem:[%s1711_s5] sm:$0x3]  ;;  %v211_v33 = vld [vmem:[%s1707_s6 + $0x28] sm:$0xff]  ;;  %v216_v34 = vld [vmem:[%s1707_s6 + $0x50] sm:$0xff]  ;;  %v290_v38 = vadd.s32 8, %v208_v29 }
   0x8   :  { %1248 = vmatprep.subr.bf16.mxu1 %v1247_v17  ;;  %308 = vperm.xlu1 %1300, %v289_v15   ;;  %v657_v31 = vpack.c.bf16 %v616_v30, %v616_v30  ;;  %v218_v36 = vld [vmem:[%s1707_s6 + $0x60] sm:$0xff]  ;;  %v212_v37 = vld [vmem:[%s1707_s6 + $0x30] sm:$0xff]  ;;  %v293_v39 = vadd.s32 8, %v211_v33  ;;  %v298_v42 = vadd.s32 8, %v216_v34  ;;  %v219_v43 = vld [vmem:[%s1707_s6 + $0x68] sm:$0xff] }
   0x9   :  { %1240 = vmatprep.subr.bf16.mxu0 %v1329_v8  ;;  %v294_v41 = vadd.s32 8, %v212_v37  ;;  %v301_v44 = vadd.s32 8, %v219_v43  ;;  %v220_v45 = vld [vmem:[%s1707_s6 + $0x70] sm:$0xff]  ;;  %v214_v47 = vld [vmem:[%s1707_s6 + $0x40] sm:$0xff]  ;;  %v221_v50 = vld [vmem:[%s1707_s6 + $0x78] sm:$0xff]  ;;  %v300_v53 = vadd.s32 8, %v218_v36 }
   0xa   :  { %1250 = vmatpush3.bf16.msra.mxu1 %v1247_v17  ;;  %v684_v32 = vsel %vm451_vm2, %v657_v31, 0  ;;  %v302_v46 = vadd.s32 8, %v220_v45  ;;  %v296_v48 = vadd.s32 8, %v214_v47  ;;  %v217_v51 = vld [vmem:[%s1707_s6 + $0x58] sm:$0xff]  ;;  %v303_v54 = vadd.s32 8, %v221_v50 }
   0xb   :  { %574 = vperm.xlu0 %1304, %v213_v21   ;;  %1242 = vmatpush3.bf16.msra.mxu0 %v1241_v22  ;;  %v299_v52 = vadd.s32 8, %v217_v51 }
   0xc   :  { %1301 = vset.pattern.permute.xlu1 %v1332_v27  ;;  %1292 = vmatprep.subr.msk.bf16.mxu1 %vm451_vm2, %v657_v31 }
   0xd   :  { %1151 = vmatmul.mubr.msk.f32.vlgmr.msra.gmra.mrb[0].mxu1 %vm38_vm0, %v113_v23  ;;  %234 = vperm.xlu1 %1301, %v209_v24  }
   0xe   :  { %1140 = vmatmul.mubr.msk.f32.vlgmr.msra.gmra.mrb[0].mxu0 %vm38_vm0, %v33_v26  ;;  %1174 = vmatpush3.bf16.msra.mxu1 %v684_v32 }
   0xf   :  { %580 = vperm.xlu0 %1304, %v1439_v25  }
  0x11   :  { %1302 = vset.pattern.permute.xlu1 %v1328_v2 }
  0x12   :  { %314 = vperm.xlu1 %1302, %v291_v28  }
  0x13   :  { %1315 = vset.pattern.permute.xlu0 %v1332_v27 }
  0x14   :  { %225 = vperm.xlu0 %1315, %v206_v3  }
  0x16   :  { %1303 = vset.pattern.permute.xlu1 %v1327_v0 }
  0x17   :  { %553 = vperm.xlu1 %1303, %v206_v3  }
  0x18   :  { %228 = vperm.xlu0 %1315, %v207_v1  }
  0x1b   :  { %559 = vperm.xlu1 %1303, %v208_v29  }
  0x1c   :  { %231 = vperm.xlu0 %1315, %v208_v29  }
  0x1f   :  { %562 = vperm.xlu1 %1303, %v209_v24  }
  0x20   :  { %237 = vperm.xlu0 %1315, %v1401_v7  }
  0x23   :  { %1305 = vset.pattern.permute.xlu1 %v1332_v27 }
  0x24   :  { %252 = vperm.xlu0 %1315, %v1439_v25   ;;  %240 = vperm.xlu1 %1305, %v211_v33  }
  0x28   :  { %255 = vperm.xlu0 %1315, %v216_v34   ;;  %1306 = vset.pattern.permute.xlu1 %v1328_v2 }
  0x29   :  { %317 = vperm.xlu1 %1306, %v292_v35  }
  0x2c   :  { %261 = vperm.xlu0 %1315, %v218_v36  }
  0x2d   :  { %1307 = vset.pattern.permute.xlu1 %v1332_v27 }
  0x2e   :  { %243 = vperm.xlu1 %1307, %v212_v37  }
  0x30   :  { %1316 = vset.pattern.permute.xlu0 %v1328_v2 }
  0x31   :  { %311 = vperm.xlu0 %1316, %v290_v38  }
  0x32   :  { %246 = vperm.xlu1 %1307, %v213_v21  }
  0x35   :  { %320 = vperm.xlu0 %1316, %v293_v39  }
  0x36   :  { %1308 = vset.pattern.permute.xlu1 %v1328_v2 }
  0x37   :  { %326 = vperm.xlu1 %1308, %v295_v40  }
  0x39   :  { %323 = vperm.xlu0 %1316, %v294_v41  }
  0x3b   :  { %1309 = vset.pattern.permute.xlu1 %v1327_v0 }
  0x3c   :  { %568 = vperm.xlu1 %1309, %v211_v33  }
  0x3d   :  { %335 = vperm.xlu0 %1316, %v298_v42  }
  0x40   :  { %571 = vperm.xlu1 %1309, %v212_v37  }
  0x41   :  { %344 = vperm.xlu0 %1316, %v301_v44  }
  0x44   :  { %1310 = vset.pattern.permute.xlu1 %v1332_v27 }
  0x45   :  { %347 = vperm.xlu0 %1316, %v302_v46   ;;  %249 = vperm.xlu1 %1310, %v214_v47   ;;  %v1019_v46 = vld [vmem:[%s1712_s3] ss:$0 sm:$0xff] }
  0x49   :  { %1321 = vset.pattern.permute.xlu0 %v1327_v0  ;;  %1311 = vset.pattern.permute.xlu1 %v1328_v2 }
  0x4a   :  { %589 = vperm.xlu0 %1321, %v218_v36   ;;  %329 = vperm.xlu1 %1311, %v296_v48  }
  0x4e   :  { %598 = vperm.xlu0 %1321, %v221_v50   ;;  %332 = vperm.xlu1 %1311, %v297_v49  }
  0x52   :  { %1312 = vset.pattern.permute.xlu1 %v1332_v27 }
  0x53   :  { %258 = vperm.xlu1 %1312, %v217_v51  }
  0x57   :  { %1313 = vset.pattern.permute.xlu1 %v1328_v2 }
  0x58   :  { %338 = vperm.xlu1 %1313, %v299_v52  }
  0x5c   :  { %1314 = vset.pattern.permute.xlu1 %v1327_v0 }
  0x5d   :  { %577 = vperm.xlu1 %1314, %v214_v47  }
  0x61   :  { %583 = vperm.xlu1 %1314, %v216_v34  }
  0x65   :  { %586 = vperm.xlu1 %1314, %v217_v51  }
  0x69   :  { %1317 = vset.pattern.permute.xlu1 %v1332_v27 }
  0x6a   :  { %264 = vperm.xlu1 %1317, %v219_v43  }
  0x6e   :  { %1318 = vset.pattern.permute.xlu1 %v1328_v2 }
  0x6f   :  { %341 = vperm.xlu1 %1318, %v300_v53  }
  0x73   :  { %1319 = vset.pattern.permute.xlu1 %v1332_v27 }
  0x74   :  { %267 = vperm.xlu1 %1319, %v220_v45  }
  0x78   :  { %270 = vperm.xlu1 %1319, %v221_v50  }
  0x7c   :  { %1320 = vset.pattern.permute.xlu1 %v1328_v2 }
  0x7d   :  { %350 = vperm.xlu1 %1320, %v303_v54  }
  0x81   :  { %1322 = vset.pattern.permute.xlu1 %v1327_v0  ;;  %v557_v55 = vpop.permute.xlu0 %556 }
  0x82   :  { %592 = vperm.xlu1 %1322, %v219_v43   ;;  %vm601_vm5 = vcmp.eq.s32.totalorder %v1510_v63, %v557_v55 }
  0x83   :  { %v306_v56 = vpop.permute.xlu1 %305  ;;  %v1047_v3 = vsel %vm601_vm5, 1.0, %v1331_v14 }
  0x84   :  { %vm352_vm8 = vcmp.eq.s32.totalorder %v1510_v63, %v306_v56 }
  0x86   :  { %v566_v57 = vpop.permute.xlu0 %565  ;;  %595 = vperm.xlu1 %1322, %v220_v45  }
  0x87   :  { %v309_v58 = vpop.permute.xlu1 %308 }
  0x88   :  { %vm353_vm10 = vcmp.eq.s32.totalorder %v1510_v63, %v309_v58 }
  0x8a   :  { %v575_v59 = vpop.permute.xlu0 %574 }
  0x8c   :  { %v235_v61 = vpop.permute.xlu1 %234 }
  0x8d   :  { %vm275_vm3 = vcmp.eq.s32.totalorder %v1510_v63, %v235_v61 }
  0x8e   :  { %v1507_v62 = vpop.permute.xlu0 %580 }
  0x91   :  { %v315_v1 = vpop.permute.xlu1 %314 }
  0x92   :  { %vm355_vm4 = vcmp.eq.s32.totalorder %v1510_v63, %v315_v1 }
  0x93   :  { %v226_v0 = vpop.permute.xlu0 %225  ;;  %vm1515_vm6 = vmor %vm275_vm3, %vm355_vm4  ;;  %vm604_vm4 = vcmp.eq.s32.totalorder %v1510_v63, %v566_v57 }
  0x94   :  { %vm272_vm7 = vcmp.eq.s32.totalorder %v1510_v63, %v226_v0  ;;  %v1050_v22 = vsel %vm604_vm4, 1.0, %v1331_v14 }
  0x95   :  { %vm368_vm9 = vmor %vm272_vm7, %vm352_vm8  ;;  %vm607_vm7 = vcmp.eq.s32.totalorder %v1510_v63, %v575_v59 }
  0x96   :  { %v554_v5 = vpop.permute.xlu1 %553  ;;  %v1022_v7 = vsel %vm368_vm9, 1.0, %v1331_v14  ;;  %v1053_v28 = vsel %vm607_vm7, 1.0, %v1331_v14  ;;  %vm609_vm9 = vcmp.eq.s32.totalorder %v1510_v63, %v1507_v62 }
  0x97   :  { %v229_v4 = vpop.permute.xlu0 %228  ;;  %vm600_vm12 = vcmp.eq.s32.totalorder %v1510_v63, %v554_v5  ;;  %v1055_v42 = vsel %vm609_vm9, 1.0, %v1331_v14 }
  0x98   :  { %vm273_vm11 = vcmp.eq.s32.totalorder %v1510_v63, %v229_v4  ;;  %v1046_v6 = vsel %vm600_vm12, 1.0, %v1331_v14  ;;  %v1025_v4 = vsel %vm1515_vm6, 1.0, %v1331_v14 }
  0x99   :  { %vm369_vm13 = vmor %vm273_vm11, %vm353_vm10  ;;  %v649_v9 = vpack.c.bf16 %v1047_v3, %v1046_v6 }
  0x9a   :  { %v1023_v8 = vsel %vm369_vm13, 1.0, %v1331_v14  ;;  %v560_v11 = vpop.permute.xlu1 %559 }
  0x9b   :  { %v416_v10 = vpack.c.bf16 %v1023_v8, %v1022_v7  ;;  %1175 = vmatprep.mubr.msk.bf16.mxu1 %vm658_vm14, %v649_v9  ;;  %vm602_vm1 = vcmp.eq.s32.totalorder %v1510_v63, %v560_v11  ;;  %v232_v23 = vpop.permute.xlu0 %231 }
  0x9c   :  { %v1048_v13 = vsel %vm602_vm1, 1.0, %v1331_v14  ;;  %vm274_vm11 = vcmp.eq.s32.totalorder %v1510_v63, %v232_v23 }
  0x9d   :  { %1157 = vmatprep.mubr.msk.bf16.mxu0 %vm426_vm15, %v416_v10 }
  0x9e   :  { %v563_v12 = vpop.permute.xlu1 %562 }
  0x9f   :  { %vm603_vm3 = vcmp.eq.s32.totalorder %v1510_v63, %v563_v12  ;;  %v238_v29 = vpop.permute.xlu0 %237 }
  0xa0   :  { %v1049_v15 = vsel %vm603_vm3, 1.0, %v1331_v14  ;;  %vm276_vm3 = vcmp.eq.s32.totalorder %v1510_v63, %v238_v29 }
  0xa1   :  { %v650_v16 = vpack.c.bf16 %v1049_v15, %v1048_v13 }
  0xa3   :  { %v1534_v17 = vpop.permute.xlu1 %240  ;;  %1176 = vmatmul.mubr.msk.bf16.vlgmr.msra.gmra.mrb[4].mxu1 %vm658_vm14, %v650_v16  ;;  %v1557_v33 = vpop.permute.xlu0 %252 }
  0xa4   :  { %vm281_vm6 = vcmp.eq.s32.totalorder %v1510_v63, %v1557_v33 }
  0xa7   :  { %v1561_v35 = vpop.permute.xlu0 %255 }
  0xa8   :  { %v1537_v18 = vpop.permute.xlu1 %317 }
  0xa9   :  { %vm356_vm7 = vcmp.eq.s32.totalorder %v1510_v63, %v1537_v18 }
  0xab   :  { %v1567_v38 = vpop.permute.xlu0 %261 }
  0xad   :  { %v1539_v19 = vpop.permute.xlu1 %243 }
  0xb0   :  { %v312_v40 = vpop.permute.xlu0 %311 }
  0xb1   :  { %v1541_v20 = vpop.permute.xlu1 %246  ;;  %vm354_vm12 = vcmp.eq.s32.totalorder %v1510_v63, %v312_v40  ;;  %v800_v40 = vshrl.u32 %v222_v60, 7  ;;  %v889_v60 = vld [vmem:[%s1714_s4 + $0x8] sm:$0xff] }
  0xb4   :  { %v321_v44 = vpop.permute.xlu0 %320 }
  0xb5   :  { %vm357_vm1 = vcmp.eq.s32.totalorder %v1510_v63, %v321_v44 }
  0xb6   :  { %v1543_v21 = vpop.permute.xlu1 %326 }
  0xb8   :  { %v324_v61 = vpop.permute.xlu0 %323 }
  0xbb   :  { %v569_v24 = vpop.permute.xlu1 %568 }
  0xbc   :  { %vm605_vm5 = vcmp.eq.s32.totalorder %v1510_v63, %v569_v24  ;;  %v336_v8 = vpop.permute.xlu0 %335 }
  0xbd   :  { %v1051_v25 = vsel %vm605_vm5, 1.0, %v1331_v14  ;;  %vm277_vm5 = vcmp.eq.s32.totalorder %v1510_v63, %v1534_v17 }
  0xbe   :  { %v651_v26 = vpack.c.bf16 %v1051_v25, %v1050_v22  ;;  %vm373_vm9 = vmor %vm277_vm5, %vm357_vm1  ;;  %vm278_vm1 = vcmp.eq.s32.totalorder %v1510_v63, %v1539_v19 }
  0xbf   :  { %v572_v27 = vpop.permute.xlu1 %571  ;;  %v1027_v3 = vsel %vm373_vm9, 1.0, %v1331_v14 }
  0xc0   :  { %vm606_vm8 = vcmp.eq.s32.totalorder %v1510_v63, %v572_v27  ;;  %1179 = vmatprep.mubr.msk.bf16.mxu1 %vm658_vm14, %v651_v26  ;;  %v345_v11 = vpop.permute.xlu0 %344 }
  0xc1   :  { %v1052_v30 = vsel %vm606_vm8, 1.0, %v1331_v14  ;;  %vm370_vm8 = vmor %vm274_vm11, %vm354_vm12  ;;  %vm359_vm11 = vcmp.eq.s32.totalorder %v1510_v63, %v1543_v21  ;;  %vm358_vm12 = vcmp.eq.s32.totalorder %v1510_v63, %v324_v61 }
  0xc2   :  { %v652_v31 = vpack.c.bf16 %v1053_v28, %v1052_v30  ;;  %v1024_v1 = vsel %vm370_vm8, 1.0, %v1331_v14 }
  0xc3   :  { %v417_v6 = vpack.c.bf16 %v1025_v4, %v1024_v1 }
  0xc4   :  { %v1554_v32 = vpop.permute.xlu1 %249  ;;  %1180 = vmatmul.mubr.msk.bf16.gmra.mrb[8].mxu1 %vm658_vm14, %v652_v31  ;;  %v348_v18 = vpop.permute.xlu0 %347 }
  0xc5   :  { %vm280_vm8 = vcmp.eq.s32.totalorder %v1510_v63, %v1554_v32 }
  0xc9   :  { %v1559_v34 = vpop.permute.xlu1 %329  ;;  %v590_v23 = vpop.permute.xlu0 %589 }
  0xca   :  { %vm360_vm5 = vcmp.eq.s32.totalorder %v1510_v63, %v1559_v34 }
  0xcb   :  { %vm376_vm9 = vmor %vm280_vm8, %vm360_vm5 }
  0xcc   :  { %v1030_v16 = vsel %vm376_vm9, 1.0, %v1331_v14 }
  0xcd   :  { %v1563_v36 = vpop.permute.xlu1 %332  ;;  %v599_v30 = vpop.permute.xlu0 %598 }
  0xd2   :  { %v1565_v37 = vpop.permute.xlu1 %258 }
  0xd7   :  { %v1569_v39 = vpop.permute.xlu1 %338 }
  0xdc   :  { %v578_v41 = vpop.permute.xlu1 %577 }
  0xdd   :  { %vm608_vm10 = vcmp.eq.s32.totalorder %v1510_v63, %v578_v41  ;;  %v1660_v41 = vadd.s32 8, %v800_v40 }
  0xde   :  { %v1054_v43 = vsel %vm608_vm10, 1.0, %v1331_v14  ;;  %vm372_vm10 = vmor %vm276_vm3, %vm356_vm7 }
  0xdf   :  { %v653_v45 = vpack.c.bf16 %v1055_v42, %v1054_v43  ;;  %v1026_v5 = vsel %vm372_vm10, 1.0, %v1331_v14  ;;  %vm363_vm10 = vcmp.eq.s32.totalorder %v1510_v63, %v1569_v39  ;;  %v1665_v42 = vld [vmem:[%s1713_s7] ss:$0 sm:$0xff]  ;;  %v890_v43 = vld [vmem:[%s1714_s4 + $0x10] sm:$0xff] }
  0xe0   :  { %v1152_v47 = vpop.f32.mrb[0].mxu1  ;;  %v584_v48 = vpop.permute.xlu1 %583  ;;  %v418_v7 = vpack.c.bf16 %v1027_v3, %v1026_v5 }
  0xe1   :  { %v203_v49 = vadd.f32 %v1152_v47, %v1019_v46  ;;  %v197_v50 = vpop.f32.mrb[1].mxu1  ;;  %1183 = vmatprep.mubr.msk.bf16.mxu1 %vm658_vm14, %v653_v45  ;;  %v108_v51 = vpop.f32.mrb[0].mxu0  ;;  %vm610_vm13 = vcmp.eq.s32.totalorder %v1510_v63, %v584_v48  ;;  %v891_v45 = vld [vmem:[%s1714_s4 + $0x18] sm:$0xff] }
  0xe2   :  { %v198_v52 = vadd.f32 %v1019_v46, %v197_v50  ;;  %v1141_v53 = vpop.f32.mrb[1].mxu0  ;;  %v1056_v57 = vsel %vm610_vm13, 1.0, %v1331_v14  ;;  %vm361_vm13 = vcmp.eq.s32.totalorder %v1510_v63, %v1563_v36  ;;  %v1287_v46 = vpack.c.bf16 %v891_v45, %v890_v43 }
  0xe3   :  { %v425_v54 = vpack.c.bf16 %v203_v49, %v203_v49  ;;  %vm377_vm7 = vmor %vm281_vm6, %vm361_vm13  ;;  %vm283_vm13 = vcmp.eq.s32.totalorder %v1510_v63, %v1565_v37  ;;  %vm365_vm6 = vcmp.eq.s32.totalorder %v1510_v63, %v345_v11 }
  0xe4   :  { %v424_v55 = vpack.c.bf16 %v198_v52, %v108_v51  ;;  %v587_v56 = vpop.permute.xlu1 %586  ;;  %v1031_v12 = vsel %vm377_vm7, 1.0, %v1331_v14 }
  0xe5   :  { %vm611_vm4 = vcmp.eq.s32.totalorder %v1510_v63, %v587_v56  ;;  %v453_v62 = vsel %vm451_vm2, %v425_v54, 0  ;;  %v420_v17 = vpack.c.bf16 %v1031_v12, %v1030_v16 }
  0xe6   :  { %v1057_v58 = vsel %vm611_vm4, 1.0, %v1331_v14  ;;  %1153 = vmatprep.subr.bf16.mxu0 %v424_v55  ;;  %vm374_vm4 = vmor %vm278_vm1, %vm358_vm12  ;;  %vm282_vm12 = vcmp.eq.s32.totalorder %v1510_v63, %v1561_v35  ;;  %vm284_vm1 = vcmp.eq.s32.totalorder %v1510_v63, %v1567_v38 }
  0xe7   :  { %v654_v59 = vpack.c.bf16 %v1057_v58, %v1056_v57  ;;  %1154 = vmatpush3.bf16.msra.mxu0 %v424_v55  ;;  %v1028_v10 = vsel %vm374_vm4, 1.0, %v1331_v14 }
  0xe8   :  { %1291 = vmatprep.subr.msk.bf16.mxu0 %vm451_vm2, %v425_v54  ;;  %vm279_vm2 = vcmp.eq.s32.totalorder %v1510_v63, %v1541_v20 }
  0xe9   :  { %v265_v0 = vpop.permute.xlu1 %264  ;;  %1184 = vmatmul.mubr.msk.bf16.gmra.mrb[12].mxu1 %vm658_vm14, %v654_v59  ;;  %vm375_vm3 = vmor %vm279_vm2, %vm359_vm11  ;;  %vm362_vm2 = vcmp.eq.s32.totalorder %v1510_v63, %v336_v8 }
  0xea   :  { %v1029_v9 = vsel %vm375_vm3, 1.0, %v1331_v14  ;;  %vm379_vm3 = vmor %vm283_vm13, %vm363_vm10  ;;  %vm285_vm4 = vcmp.eq.s32.totalorder %v1510_v63, %v265_v0  ;;  %vm366_vm13 = vcmp.eq.s32.totalorder %v1510_v63, %v348_v18 }
  0xeb   :  { %1156 = vmatpush3.bf16.msra.mxu0 %v453_v62  ;;  %v419_v15 = vpack.c.bf16 %v1029_v9, %v1028_v10  ;;  %vm378_vm7 = vmor %vm282_vm12, %vm362_vm2  ;;  %v1033_v20 = vsel %vm379_vm3, 1.0, %v1331_v14  ;;  %vm612_vm2 = vcmp.eq.s32.totalorder %v1510_v63, %v590_v23 }
  0xec   :  { %vm381_vm8 = vmor %vm285_vm4, %vm365_vm6  ;;  %v1032_v22 = vsel %vm378_vm7, 1.0, %v1331_v14  ;;  %v1058_v29 = vsel %vm612_vm2, 1.0, %v1331_v14  ;;  %vm615_vm6 = vcmp.eq.s32.totalorder %v1510_v63, %v599_v30 }
  0xed   :  { %v421_v24 = vpack.c.bf16 %v1033_v20, %v1032_v22  ;;  %v1035_v25 = vsel %vm381_vm8, 1.0, %v1331_v14  ;;  %v1061_v37 = vsel %vm615_vm6, 1.0, %v1331_v14 }
  0xee   :  { %1158 = vmatmul.mubr.msk.bf16.vlgmr.msra.gmra.mrb[4].mxu0 %vm426_vm15, %v417_v6  ;;  %v342_v2 = vpop.permute.xlu1 %341 }
  0xef   :  { %1161 = vmatprep.mubr.msk.bf16.mxu0 %vm426_vm15, %v418_v7  ;;  %vm364_vm11 = vcmp.eq.s32.totalorder %v1510_v63, %v342_v2 }
  0xf0   :  { %vm380_vm5 = vmor %vm284_vm1, %vm364_vm11 }
  0xf1   :  { %v1034_v21 = vsel %vm380_vm5, 1.0, %v1331_v14  ;;  %vm808_vm5 = vcmp.eq.s32.totalorder %v1660_v41, %v1665_v42 }
  0xf2   :  { %v422_v27 = vpack.c.bf16 %v1035_v25, %v1034_v21 }
  0xf3   :  { %v268_v13 = vpop.permute.xlu1 %267 }
  0xf4   :  { %vm286_vm9 = vcmp.eq.s32.totalorder %v1510_v63, %v268_v13 }
  0xf5   :  { %vm382_vm1 = vmor %vm286_vm9, %vm366_vm13 }
  0xf6   :  { %1162 = vmatmul.mubr.msk.bf16.gmra.mrb[8].mxu0 %vm426_vm15, %v419_v15  ;;  %v1036_v32 = vsel %vm382_vm1, 1.0, %v1331_v14 }
  0xf7   :  { %1165 = vmatprep.mubr.msk.bf16.mxu0 %vm426_vm15, %v420_v17  ;;  %v271_v19 = vpop.permute.xlu1 %270 }
  0xf8   :  { %vm287_vm10 = vcmp.eq.s32.totalorder %v1510_v63, %v271_v19 }
  0xfc   :  { %v351_v26 = vpop.permute.xlu1 %350 }
  0xfd   :  { %vm367_vm11 = vcmp.eq.s32.totalorder %v1510_v63, %v351_v26 }
  0xfe   :  { %vm383_vm12 = vmor %vm287_vm10, %vm367_vm11  ;;  %1166 = vmatmul.mubr.msk.bf16.gmra.mrb[12].mxu0 %vm426_vm15, %v421_v24 }
  0xff   :  { %1169 = vmatprep.mubr.msk.bf16.mxu0 %vm426_vm15, %v422_v27  ;;  %v1037_v28 = vsel %vm383_vm12, 1.0, %v1331_v14 }
 0x100   :  { %v423_v34 = vpack.c.bf16 %v1037_v28, %v1036_v32 }
 0x101   :  { %v593_v31 = vpop.permute.xlu1 %592 }
 0x102   :  { %vm613_vm3 = vcmp.eq.s32.totalorder %v1510_v63, %v593_v31 }
 0x103   :  { %v1059_v33 = vsel %vm613_vm3, 1.0, %v1331_v14 }
 0x104   :  { %v655_v35 = vpack.c.bf16 %v1059_v33, %v1058_v29 }
 0x105   :  { %v596_v36 = vpop.permute.xlu1 %595 }
 0x106   :  { %vm614_vm4 = vcmp.eq.s32.totalorder %v1510_v63, %v596_v36  ;;  %1170 = vmatmul.mubr.msk.bf16.gmra.mrb[16].mxu0 %vm426_vm15, %v423_v34  ;;  %1187 = vmatprep.mubr.msk.bf16.mxu1 %vm658_vm14, %v655_v35  ;;  %vm807_vm15 = vcmp.eq.s32.totalorder %v800_v40, %v1665_v42  ;;  %v1333_v63 = vmov 1.0  }
 0x107   :  { %v1060_v38 = vsel %vm614_vm4, 1.0, %v1331_v14  ;;  %v888_v14 = vld [vmem:[%s1714_s4] sm:$0xff] }
 0x108   :  { %v656_v39 = vpack.c.bf16 %v1061_v37, %v1060_v38  ;;  %v1283_v44 = vpack.c.bf16 %v889_v60, %v888_v14 }
 0x10a   :  { %1188 = vmatmul.mubr.msk.bf16.gmra.mrb[16].mxu1 %vm658_vm14, %v656_v39  ;;  %1284 = vmatprep.subr.bf16.mxu0 %v1283_v44 }
 0x10b   :  { %1223 = vmatprep.mubr.msk.f32.mxu1 %vm807_vm15, %v1333_v63  ;;  %1286 = vmatpush3.bf16.msra.mxu0 %v1283_v44 }
 0x10c   :  { %1288 = vmatprep.subr.bf16.mxu0 %v1287_v46 }
 0x10f   :  { %1290 = vmatpush3.bf16.msra.mxu0 %v1287_v46 }
 0x176   :  { %v1177_v47 = vpop.f32.mrb[4].mxu1 }
 0x177   :  { %v720_v48 = vpop.f32.mrb[5].mxu1 }
 0x178   :  { %v1178_v49 = vpop.f32.mrb[6].mxu1 }
 0x179   :  { %v723_v50 = vpop.f32.mrb[7].mxu1 }
 0x197   :  { %v1181_v51 = vpop.f32.mrb[8].mxu1 }
 0x198   :  { %v736_v52 = vpop.f32.mrb[9].mxu1 }
 0x199   :  { %v1182_v53 = vpop.f32.mrb[10].mxu1 }
 0x19a   :  { %v739_v54 = vpop.f32.mrb[11].mxu1 }
 0x1bc   :  { %v1185_v55 = vpop.f32.mrb[12].mxu1 }
 0x1bd   :  { %v752_v56 = vpop.f32.mrb[13].mxu1 }
 0x1be   :  { %v1186_v57 = vpop.f32.mrb[14].mxu1 }
 0x1bf   :  { %v755_v58 = vpop.f32.mrb[15].mxu1 }
 0x1c1   :  { %v1159_v59 = vpop.f32.mrb[4].mxu0 }
 0x1c2   :  { %v785_v61 = vmul.f32 %v1177_v47, %v1159_v59  ;;  %v489_v62 = vpop.f32.mrb[5].mxu0 }
 0x1c3   :  { %v783_v1 = vmul.f32 %v720_v48, %v489_v62  ;;  %v1160_v0 = vpop.f32.mrb[6].mxu0 }
 0x1c4   :  { %v786_v3 = vmul.f32 %v1178_v49, %v1160_v0  ;;  %v492_v4 = vpop.f32.mrb[7].mxu0 }
 0x1c5   :  { %v784_v5 = vmul.f32 %v723_v50, %v492_v4 }
 0x1c6   :  { %v1255_v6 = vpack.c.bf16 %v786_v3, %v785_v61 }
 0x1c7   :  { %v1251_v7 = vpack.c.bf16 %v784_v5, %v783_v1 }
 0x1c9   :  { %v1163_v8 = vpop.f32.mrb[8].mxu0  ;;  %1252 = vmatprep.subr.bf16.mxu1 %v1251_v7 }
 0x1ca   :  { %v789_v2 = vmul.f32 %v1181_v51, %v1163_v8  ;;  %v505_v9 = vpop.f32.mrb[9].mxu0  ;;  %1254 = vmatpush3.bf16.msra.mxu1 %v1251_v7 }
 0x1cb   :  { %v787_v10 = vmul.f32 %v736_v52, %v505_v9  ;;  %v1164_v11 = vpop.f32.mrb[10].mxu0  ;;  %1256 = vmatprep.subr.bf16.mxu1 %v1255_v6 }
 0x1cc   :  { %v790_v12 = vmul.f32 %v1182_v53, %v1164_v11  ;;  %v508_v13 = vpop.f32.mrb[11].mxu0  ;;  %v1009_v11 = vld [vmem:[%s1715_s8 + $0x8] sm:$0xff] }
 0x1cd   :  { %v788_v15 = vmul.f32 %v739_v54, %v508_v13 }
 0x1ce   :  { %v1263_v16 = vpack.c.bf16 %v790_v12, %v789_v2  ;;  %1258 = vmatpush3.bf16.msra.mxu1 %v1255_v6  ;;  %v1008_v2 = vld [vmem:[%s1715_s8] sm:$0xff] }
 0x1cf   :  { %v1259_v17 = vpack.c.bf16 %v788_v15, %v787_v10 }
 0x1d1   :  { %v1167_v18 = vpop.f32.mrb[12].mxu0  ;;  %1260 = vmatprep.subr.bf16.mxu1 %v1259_v17 }
 0x1d2   :  { %v793_v19 = vmul.f32 %v1185_v55, %v1167_v18  ;;  %v521_v20 = vpop.f32.mrb[13].mxu0  ;;  %1262 = vmatpush3.bf16.msra.mxu1 %v1259_v17 }
 0x1d3   :  { %v791_v21 = vmul.f32 %v752_v56, %v521_v20  ;;  %v1168_v22 = vpop.f32.mrb[14].mxu0  ;;  %1264 = vmatprep.subr.bf16.mxu1 %v1263_v16 }
 0x1d4   :  { %v794_v23 = vmul.f32 %v1186_v57, %v1168_v22  ;;  %v524_v24 = vpop.f32.mrb[15].mxu0 }
 0x1d5   :  { %v792_v25 = vmul.f32 %v755_v58, %v524_v24 }
 0x1d6   :  { %v1271_v26 = vpack.c.bf16 %v794_v23, %v793_v19  ;;  %1266 = vmatpush3.bf16.msra.mxu1 %v1263_v16 }
 0x1d7   :  { %v1267_v27 = vpack.c.bf16 %v792_v25, %v791_v21 }
 0x1d9   :  { %v1171_v28 = vpop.f32.mrb[16].mxu0  ;;  %1268 = vmatprep.subr.bf16.mxu1 %v1267_v27 }
 0x1da   :  { %v537_v29 = vpop.f32.mrb[17].mxu0  ;;  %1270 = vmatpush3.bf16.msra.mxu1 %v1267_v27 }
 0x1db   :  { %v1172_v30 = vpop.f32.mrb[18].mxu0  ;;  %1272 = vmatprep.subr.bf16.mxu1 %v1271_v26 }
 0x1dc   :  { %v540_v31 = vpop.f32.mrb[19].mxu0 }
 0x1dd   :  { %v1189_v32 = vpop.f32.mrb[16].mxu1 }
 0x1de   :  { %v797_v33 = vmul.f32 %v1189_v32, %v1171_v28  ;;  %1274 = vmatpush3.bf16.msra.mxu1 %v1271_v26  ;;  %v768_v34 = vpop.f32.mrb[17].mxu1 }
 0x1df   :  { %v795_v35 = vmul.f32 %v768_v34, %v537_v29  ;;  %v1190_v36 = vpop.f32.mrb[18].mxu1 }
 0x1e0   :  { %v798_v37 = vmul.f32 %v1190_v36, %v1172_v30  ;;  %v771_v38 = vpop.f32.mrb[19].mxu1 }
 0x1e1   :  { %v796_v39 = vmul.f32 %v771_v38, %v540_v31 }
 0x1e2   :  { %v1279_v40 = vpack.c.bf16 %v798_v37, %v797_v33 }
 0x1e3   :  { %v1275_v14 = vpack.c.bf16 %v796_v39, %v795_v35 }
 0x1e5   :  { %1276 = vmatprep.subr.bf16.mxu1 %v1275_v14 }
 0x1e6   :  { %1278 = vmatpush3.bf16.msra.mxu1 %v1275_v14 }
 0x1e7   :  { %1280 = vmatprep.subr.bf16.mxu1 %v1279_v40 }
 0x1ea   :  { %1282 = vmatpush3.bf16.msra.mxu1 %v1279_v40 }
 0x1ed   :  { %1224 = vmatmul.mubr.msk.f32.vlgmr.msra.gmra.mrb[2].mxu1 %vm808_vm5, %v1333_v63 }
 0x2c0   :  { %v1225_v60 = vpop.f32.mrb[2].mxu1 }
 0x2c1   :  { %v879_v43 = vpop.f32.mrb[3].mxu1 }
 0x2c2   :  { %1234 = vmatprep.mubr.msk.f32.mxu0 %vm38_vm0, %v879_v43 }
 0x2c3   :  { %1235 = vmatmul.mubr.msk.f32.vlgmr.msra.gmra.mrb[2].mxu0 %vm38_vm0, %v1225_v60 }
 0x396   :  { %v1236_v44 = vpop.f32.mrb[2].mxu0 }
 0x397   :  { %v964_v45 = vpop.f32.mrb[3].mxu0  ;;  %v976_v46 = vsel %vm38_vm0, %v1236_v44, 0.0  ;;  %v983_v49 = vmul.f32 %v1236_v44, %v1236_v44 }
 0x398   :  { %v982_v47 = vmul.f32 %v964_v45, %v964_v45  ;;  %977 = vadd.xlane.f32.xlu0 %v976_v46  ;;  %v973_v48 = vsel %vm38_vm0, %v964_v45, 0.0 }
 0x399   :  { %974 = vadd.xlane.f32.xlu1 %v973_v48  ;;  %v987_v41 = vsel %vm38_vm0, %v983_v49, 0.0 }
 0x39a   :  { %v984_v50 = vsel %vm38_vm0, %v982_v47, 0.0 }
 0x39c   :  { %985 = vadd.xlane.f32.xlu0 %v984_v50 }
 0x39d   :  { %988 = vadd.xlane.f32.xlu1 %v987_v41 }
 0x425   :  { %v978_v42 = vpop.xlane.xlu0 %977 }
 0x426   :  { %v975_v63 = vpop.xlane.xlu1 %974  ;;  %v981_v51 = vmul.f32 0.03125, %v978_v42 }
 0x427   :  { %v980_v52 = vmul.f32 0.03125, %v975_v63 }
 0x428   :  { %v993_v57 = vmul.f32 %v981_v51, %v981_v51  ;;  %v999_v6 = vsub.f32 %v1236_v44, %v981_v51 }
 0x429   :  { %v992_v53 = vmul.f32 %v980_v52, %v980_v52  ;;  %v986_v54 = vpop.xlane.xlu0 %985  ;;  %v998_v4 = vsub.f32 %v964_v45, %v980_v52 }
 0x42a   :  { %v990_v55 = vmul.f32 0.03125, %v986_v54  ;;  %v989_v56 = vpop.xlane.xlu1 %988 }
 0x42b   :  { %v991_v58 = vmul.f32 0.03125, %v989_v56 }
 0x42c   :  { %v994_v59 = vsub.f32 %v990_v55, %v992_v53 }
 0x42d   :  { %v995_v61 = vsub.f32 %v991_v58, %v993_v57 }
 0x42e   :  { %v996_v62 = vmax.f32 %v994_v59, 0.0 }
 0x42f   :  { %v997_v1 = vmax.f32 %v995_v61, 0.0 }
 0x430   :  { %v1000_v0 = vadd.f32 1e-05, %v996_v62 }
 0x431   :  { %v1001_v3 = vadd.f32 1e-05, %v997_v1 }
 0x432   :  { %1323 = vrsqrt.f32 %v1000_v0 }
 0x433   :  { %1325 = vrsqrt.f32 %v1001_v3 }
 0x43c   :  { %v1324_v5 = vpop.eup %1323 }
 0x43d   :  { %v1326_v7 = vpop.eup %1325  ;;  %v1004_v8 = vmul.f32 %v1324_v5, %v998_v4 }
 0x43e   :  { %v1005_v9 = vmul.f32 %v1326_v7, %v999_v6 }
 0x43f   :  { %v1006_v10 = vmax.f32 %v1004_v8, 0.0 }
 0x440   :  { %v1007_v12 = vmax.f32 %v1005_v9, 0.0 }
 0x441   :  { %v1010_v13 = vadd.f32 %v1008_v2, %v1006_v10 }
 0x442   :  { %v1011_v15 = vadd.f32 %v1009_v11, %v1007_v12 }
 0x443   :  { %1012 = vst.msk [vmem:[%s1716_s9] sm:$0xff] %vm38_vm0, %v1010_v13 }
 0x444   :  { %1013 = vst.msk [vmem:[%s1716_s9 + $0x8] sm:$0xff] %vm38_vm0, %v1011_v15 }

// kernel: device_forward.3
= control target key start
LH: loop header
LB: loop body
LE: loop exit
PB: predicated region body
PF: predicated region fallthrough
CT: control target
= control target key end

     0   :  { %s3303_s0 = inlined_call_operand.vmem [shape: f32[16,32], index: 0, kind: input, shape index: {}]   ;;  %s3304_s1 = inlined_call_operand.vmem [shape: s32[8,16], index: 1, kind: input, shape index: {}]   ;;  %s3305_s2 = inlined_call_operand.vmem [shape: f32[2,1,32], index: 2, kind: input, shape index: {}]   ;;  %s3306_s3 = inlined_call_operand.vmem [shape: f32[2,1,32], index: 3, kind: input, shape index: {}]   ;;  %s3307_s4 = inlined_call_operand.vmem [shape: s32[128,8], index: 4, kind: input, shape index: {}]   ;;  %s3308_s5 = inlined_call_operand.vmem [shape: s32[1,128], index: 5, kind: input, shape index: {}]   ;;  %s3309_s6 = inlined_call_operand.vmem [shape: f32[64,32], index: 6, kind: input, shape index: {}]   ;;  %s3310_s7 = inlined_call_operand.vmem [shape: f32[32,32], index: 7, kind: input, shape index: {}]   ;;  %s3311_s8 = inlined_call_operand.vmem [shape: f32[10,32], index: 8, kind: input, shape index: {}]   ;;  %s3312_s9 = inlined_call_operand.vmem [shape: f32[64,32], index: 9, kind: input, shape index: {}]   ;;  %s3313_s10 = inlined_call_operand.vmem [shape: f32[1,32], index: 10, kind: input, shape index: {}]   ;;  %s3314_s11 = inlined_call_operand.vmem [shape: f32[32,32], index: 11, kind: input, shape index: {}]   ;;  %s3315_s12 = inlined_call_operand.vmem [shape: f32[64,32], index: 12, kind: input, shape index: {}]   ;;  %s3316_s13 = inlined_call_operand.vmem [shape: f32[1,32], index: 13, kind: input, shape index: {}]   ;;  %s3317_s14 = inlined_call_operand.vmem [shape: f32[1,32], index: 14, kind: input, shape index: {}]   ;;  %s3318_s15 = inlined_call_operand.<no memory space> [shape: f32[1,1], index: 15, kind: input, shape index: {}]   ;;  %s3319_s16 = inlined_call_operand.hbm [shape: f32[2,1,32], index: 16, kind: output, shape index: {}]  }
   0x1   :  { %3325 = sst [smem:[#allocation8_spill]] %s3303_s0  ;;  %v21_v0 = vstv %s3318_s15 }
   0x2   :  { %3326 = sst [smem:[#allocation9_spill]] %s3304_s1  ;;  %22 = vst [vmem:[#allocation2] sm:$0x1] %v21_v0 }
   0x3   :  { %3327 = sst [smem:[#allocation10_spill]] %s3305_s2 }
   0x4   :  { %3328 = sst [smem:[#allocation11_spill]] %s3309_s6 }
   0x5   :  { %23 = vsyncpa [#allocation4], 0 }
   0x6   :  { %25 = vsyncpa [#allocation4 + $0x1], 0  ;;  %s2748_s23 = smov 0   ;;  %s2750_s24 = smov 0  }
   0x7   :  { %s2752_s25 = smov 0   ;;  %s2754_s26 = smov 0  }
   0x8 LB: > { %3329 = sst [smem:[#allocation6_spill]] %s2646_s25  ;;  %s2769_s15 = sadd.s32 4294967295, %s2650_s26   ;;  %s2650_s26 = sphi %s2754_s26, %s3342_s26   ;;  %s2646_s25 = sphi %s2752_s25, %s3339_s25   ;;  %s2642_s24 = sphi %s2750_s24, %s3341_s24   ;;  %s2638_s23 = sphi %s2748_s23, %s3340_s23  }
   0x9   : > { %s2029_s27 = sadd.s32 4294967294, %s2650_s26   ;;  %s2773_s28 = sadd.s32 1, %s2650_s26  }
   0xa   : > { %s384_s29 = sadd.s32 1, %s2646_s25  ;;  %s381_s30 = ssub.s32 %s2650_s26, %s2773_s28 }
   0xb   : > { %p394_p0 = scmp.ne.s32.totalorder %s2646_s25, %s2642_s24  ;;  %p382_p1 = scmp.eq.s32.totalorder %s381_s30, 0 }
   0xc   : > { %p395_p2 = scmp.eq.s32.totalorder %s2769_s15, 1  ;;  %p400_p3 = scmp.ne.s32.totalorder %s2642_s24, %s2638_s23 }
   0xd   : > { %p401_p4 = scmp.eq.s32.totalorder %s2029_s27, 1  ;;  %p2032_p7 = scmp.ge.s32.totalorder %s2650_s26, 1 }
   0xe   : > { %s2784_s0 = scalar_select %p382_p1, %s2646_s25, %s384_s29  }
   0xf   : > { %p2786_p5 = por %p395_p2, %p394_p0  ;;  %p2790_p6 = por %p401_p4, %p400_p3 }
  0x10   : > { %3330 = sst [smem:[#allocation7_spill]] %s2784_s0  ;;  %p473_p8 = scmp.lt.s32.totalorder %s2650_s26, 3 }
  0x12   : > { %p474_p9 = pnand %p2032_p7, %p473_p8 }
  0x13   : > { %s3333_s21 = sld [smem:[#allocation8_spill]] (!%p474_p9)  ;;  %s3334_s1 = sld [smem:[#allocation9_spill]] (!%p474_p9)  ;;  %v534_v4 = vlaneseq (!%p474_p9)  ;;  %v539_v5 = vstv (!%p474_p9), %s2769_s15  ;;  %v2652_v8 = vmov (!%p474_p9), 0   ;;  %v2654_v26 = vmov (!%p474_p9), 0.0   ;;  %v858_v36 = vld [vmem:[%s3311_s8] sm:$0xff] (!%p474_p9)  ;;  %v752_v39 = vld [vmem:[%s3310_s7 + $0x8] sm:$0xff] (!%p474_p9) }
  0x14   : > { %477 = sbr.rel (%p474_p9) target bundleno = 2021 (0x7e5), region = 84  ;;  %p523_p10 = scmp.lt.s32.totalorder (!%p474_p9), %s2769_s15, 1  ;;  %2559 = vset.pattern.permute.xlu1 (!%p474_p9), %v2652_v8  ;;  %vm572_vm8 = vcmask (!%p474_p9), 130048   ;;  %v859_v37 = vld [vmem:[%s3311_s8 + $0x8] sm:$0x3] (!%p474_p9)  ;;  %v751_v38 = vld [vmem:[%s3310_s7] sm:$0xff] (!%p474_p9) }
  0x15   : > { %s3335_s6 = sld [smem:[#allocation11_spill]] (!%p474_p9)  ;;  %v2812_v9 = vshrl.u32 (!%p474_p9), %v534_v4, 7  ;;  %s3336_s2 = sld [smem:[#allocation10_spill]] (!%p474_p9)  ;;  %v2424_v40 = vpack.c.bf16 (!%p474_p9), %v752_v39, %v751_v38  ;;  %vm636_vm11 = vcmask (!%p474_p9), 261120   ;;  %vm649_vm12 = vcmask (!%p474_p9), 523264   ;;  %v753_v50 = vld [vmem:[%s3310_s7 + $0x10] sm:$0xff] (!%p474_p9) }
  0x16   : > { %s3323_s0 = smov (!%p474_p9), 32   ;;  %s3337_s19 = smov (!%p474_p9), 32   ;;  %v754_v51 = vld [vmem:[%s3310_s7 + $0x18] sm:$0xff] (!%p474_p9)  ;;  %v870_v53 = vld [vmem:[%s3312_s9] sm:$0xff] (!%p474_p9)  ;;  %v871_v54 = vld [vmem:[%s3312_s9 + $0x8] sm:$0xff] (!%p474_p9)  ;;  %v2655_v57 = vmov (!%p474_p9), 1  }
  0x17   : > { %v2831_v17 = vadd.s32 (!%p474_p9), 8, %v2812_v9  ;;  %v552_v18 = vsub.s32 (!%p474_p9), 0, %v2812_v9  ;;  %v2835_v19 = vadd.s32 (!%p474_p9), 16, %v2812_v9  ;;  %v2844_v22 = vadd.s32 (!%p474_p9), 24, %v2812_v9  ;;  %864 = vrot.lane.b32.xlu1 (!%p474_p9), %v859_v37, %s3337_s19  ;;  %v966_v56 = vld [vmem:[%s3307_s4] sm:$0xff] (!%p474_p9)  ;;  %2562 = vset.pattern.permute.xlu0 (!%p474_p9), %v2655_v57  ;;  %v967_v58 = vld [vmem:[%s3307_s4 + $0x8] sm:$0xff] (!%p474_p9) }
  0x18   : > { %v2428_v52 = vpack.c.bf16 (!%p474_p9), %v754_v51, %v753_v50  ;;  %v2901_v55 = vpack.c.bf16 (!%p474_p9), %v871_v54, %v870_v53  ;;  %v968_v59 = vld [vmem:[%s3307_s4 + $0x10] sm:$0xff] (!%p474_p9)  ;;  %v969_v61 = vld [vmem:[%s3307_s4 + $0x18] sm:$0xff] (!%p474_p9)  ;;  %v970_v63 = vld [vmem:[%s3307_s4 + $0x20] sm:$0xff] (!%p474_p9)  ;;  %v3005_v38 = vand.u32 (!%p474_p9), 127, %v534_v4  ;;  %vm1316_vm15 = vcmask (!%p474_p9), 80896   ;;  %s2124_s27 = sshll.u32 (!%p474_p9), %s2769_s15, 4 }
  0x19   : > { %v559_v1 = vld [vmem:[%s3333_s21] sm:$0xff] (!%p474_p9)  ;;  %v560_v2 = vld [vmem:[%s3333_s21 + $0x8] sm:$0xff] (!%p474_p9)  ;;  %v972_v60 = vld [vmem:[%s3307_s4 + $0x30] sm:$0xff] (!%p474_p9)  ;;  %s3261_s22 = scalar_lea.hbm (!%p474_p9), %s3319_s16, %s2124_s27 }
  0x1a   : > { %v532_v3 = vld [vmem:[%s3334_s1] sm:$0x1] (!%p474_p9)  ;;  %v571_v6 = vpack.c.bf16 (!%p474_p9), %v560_v2, %v559_v1  ;;  %v2033_v13 = vld [vmem:[%s3334_s1 + $0x1] ss:$0 sm:$0xff] (!%p474_p9)  ;;  %v976_v62 = vld [vmem:[%s3307_s4 + $0x50] sm:$0xff] (!%p474_p9) }
  0x1b   : > { %vm540_vm0 = vcmp.eq.s32.totalorder %v532_v3, %v539_v5  ;;  %v641_v7 = vld [vmem:[%s3335_s6] sm:$0xff]  ;;  %v642_v10 = vld [vmem:[%s3335_s6 + $0x8] sm:$0xff]  ;;  %v643_v11 = vld [vmem:[%s3335_s6 + $0x10] sm:$0xff]  ;;  %s2828_s21 = scalar_select %p523_p10, %s2769_s15, 1  ;;  %vm545_vm1 = vcmp.eq.s32.totalorder %v2033_v13, %v2812_v9  ;;  %vm546_vm2 = vcmp.eq.s32.totalorder %v2033_v13, %v2831_v17  ;;  %vm547_vm4 = vcmp.eq.s32.totalorder %v2033_v13, %v2835_v19  ;;  %985 = vperm.xlu1 %2559, %v966_v56  }
  0x1c   : > { %v644_v12 = vld [vmem:[%s3335_s6 + $0x18] sm:$0xff]  ;;  %2224 = vmatprep.subr.bf16.mxu0 %v571_v6  ;;  %v549_v14 = vsel %vm540_vm0, 1, %v2652_v8  ;;  %v2408_v15 = vpack.c.bf16 %v642_v10, %v641_v7  ;;  %v645_v20 = vld [vmem:[%s3335_s6 + $0x20] sm:$0xff]  ;;  %v646_v21 = vld [vmem:[%s3335_s6 + $0x28] sm:$0xff]  ;;  %vm548_vm6 = vcmp.eq.s32.totalorder %v2033_v13, %v2844_v22  ;;  %s2659_s15 = smov [#allocation3]  }
  0x1d   : > { %v2412_v16 = vpack.c.bf16 %v644_v12, %v643_v11  ;;  %2225 = vmatpush3.bf16.msra.mxu0 %v571_v6  ;;  %s525_s25 = scalar_lea.vmem %s3336_s2, %s2828_s21  ;;  %v553_v23 = vrot.slane %v549_v14, %v552_v18  ;;  %v2416_v25 = vpack.c.bf16 %v646_v21, %v645_v20  ;;  %v647_v33 = vld [vmem:[%s3335_s6 + $0x30] sm:$0xff]  ;;  %v648_v34 = vld [vmem:[%s3335_s6 + $0x38] sm:$0xff]  ;;  %v971_v0 = vld [vmem:[%s3307_s4 + $0x28] sm:$0xff]  ;;  %s521_s6 = sand.u32 1, %s2642_s24  }
  0x1e   : > { %2409 = vmatprep.subr.bf16.mxu1 %v2408_v15  ;;  %v2040_v24 = vld [vmem:[%s525_s25] ss:$0 sm:$0xff]  ;;  %v2420_v35 = vpack.c.bf16 %v648_v34, %v647_v33  ;;  %2425 = vmatprep.subr.bf16.mxu0 %v2424_v40  ;;  %v973_v1 = vld [vmem:[%s3307_s4 + $0x38] sm:$0xff]  ;;  %v975_v2 = vld [vmem:[%s3307_s4 + $0x48] sm:$0xff]  ;;  %s528_s25 = scalar_lea.vmem %s3306_s3, %s2828_s21  ;;  %s522_s29 = scalar_lea.vmem [#allocation3], %s521_s6 }
  0x1f   : > { %2411 = vmatpush3.bf16.msra.mxu1 %v2408_v15  ;;  %633 = vrot.lane.b32.xlu0 %v2040_v24, %s3323_s0  ;;  %vm554_vm3 = vcmp.eq.s32.totalorder %v553_v23, 1  ;;  %v979_v3 = vld [vmem:[%s3307_s4 + $0x68] sm:$0xff]  ;;  %v974_v5 = vld [vmem:[%s3307_s4 + $0x40] sm:$0xff]  ;;  %v980_v6 = vld [vmem:[%s3307_s4 + $0x70] sm:$0xff]  ;;  %s1968_s30 = sshll.u32 %s522_s29, 4  ;;  %s1956_s1 = scalar_lea.sflag [#allocation4], %s521_s6  ;;  %s3263_s30 = int_to_ptr.vmem [resolvable:$true] %s1968_s30 }
  0x20   : > { %2413 = vmatprep.subr.bf16.mxu1 %v2412_v16  ;;  %vm555_vm5 = vmand %vm554_vm3, %vm545_vm1  ;;  %2560 = vset.pattern.permute.xlu1 %v2655_v57  ;;  %v977_v7 = vld [vmem:[%s3307_s4 + $0x58] sm:$0xff]  ;;  %v978_v10 = vld [vmem:[%s3307_s4 + $0x60] sm:$0xff]  ;;  %s2592_s2 = sshll.u32 %s2659_s15, 4  ;;  %s2593_s2 = int_to_ptr.vmem [resolvable:$false] %s2592_s2 }
  0x21   : > { %vm556_vm7 = vmand %vm554_vm3, %vm546_vm2  ;;  %v2034_v27 = vsel %vm555_vm5, 1.0, %v2654_v26  ;;  %1212 = vperm.xlu1 %2560, %v966_v56   ;;  %v981_v11 = vld [vmem:[%s3307_s4 + $0x78] sm:$0xff]  ;;  %v872_v13 = vld [vmem:[%s3312_s9 + $0x10] sm:$0xff]  ;;  %s2594_s21 = scalar_lea.vmem %s2593_s2, 32  ;;  %p2595_p0 = scmp.lt.s32.totalorder %s3263_s30, %s2593_s2 }
  0x22   : > { %v2035_v28 = vsel %vm556_vm7, 1.0, %v2654_v26  ;;  %vm557_vm9 = vmand %vm554_vm3, %vm547_vm4  ;;  %v873_v14 = vld [vmem:[%s3312_s9 + $0x18] sm:$0xff]  ;;  %v875_v24 = vld [vmem:[%s3312_s9 + $0x28] sm:$0xff] }
  0x23   : > { %2415 = vmatpush3.bf16.msra.mxu1 %v2412_v16  ;;  %v569_v29 = vpack.c.bf16 %v2035_v28, %v2034_v27  ;;  %vm558_vm10 = vmand %vm554_vm3, %vm548_vm6  ;;  %v2036_v30 = vsel %vm557_vm9, 1.0, %v2654_v26  ;;  %862 = vrot.lane.b32.xlu0 %v858_v36, %s3337_s19  ;;  %v2436_v21 = vpack.c.bf16 %v873_v14, %v872_v13  ;;  %v876_v33 = vld [vmem:[%s3312_s9 + $0x30] sm:$0xff]  ;;  %v877_v34 = vld [vmem:[%s3312_s9 + $0x38] sm:$0xff] }
  0x24   : > { %2417 = vmatprep.subr.bf16.mxu1 %v2416_v25  ;;  %v2037_v31 = vsel %vm558_vm10, 1.0, %v2654_v26  ;;  %v2444_v36 = vpack.c.bf16 %v877_v34, %v876_v33 }
  0x25   : > { %2226 = vmatprep.mubr.msk.bf16.mxu0 %vm572_vm8, %v569_v29  ;;  %v570_v32 = vpack.c.bf16 %v2037_v31, %v2036_v30  ;;  %1215 = vperm.xlu1 %2560, %v967_v58  }
  0x27   : > { %2419 = vmatpush3.bf16.msra.mxu1 %v2416_v25  ;;  %2227 = vmatmul.mubr.msk.bf16.vlgmr.msra.gmra.mrb[0].mxu0 %vm572_vm8, %v570_v32  ;;  %v2989_v25 = vld [vmem:[%s528_s25] ss:$0 sm:$0xff] }
  0x28   : > { %2421 = vmatprep.subr.bf16.mxu1 %v2420_v35  ;;  %2427 = vmatpush3.bf16.msra.mxu0 %v2424_v40 }
  0x29   : > { %2429 = vmatprep.subr.bf16.mxu0 %v2428_v52  ;;  %1218 = vperm.xlu0 %2562, %v968_v59  }
  0x2a   : > { %2561 = vset.pattern.permute.xlu1 %v2652_v8 }
  0x2b   : > { %2423 = vmatpush3.bf16.msra.mxu1 %v2420_v35  ;;  %994 = vperm.xlu1 %2561, %v969_v61  }
  0x2c   : > { %2431 = vmatpush3.bf16.msra.mxu0 %v2428_v52 }
  0x2d   : > { %2433 = vmatprep.subr.bf16.mxu0 %v2901_v55  ;;  %1230 = vperm.xlu0 %2562, %v972_v60  }
  0x2f   : > { %2563 = vset.pattern.permute.xlu1 %v2655_v57 }
  0x30   : > { %1221 = vperm.xlu1 %2563, %v969_v61  }
  0x31   : > { %1242 = vperm.xlu0 %2562, %v976_v62  }
  0x34   : > { %2564 = vset.pattern.permute.xlu1 %v2652_v8 }
  0x35   : > { %2571 = vset.pattern.permute.xlu0 %v2652_v8  ;;  %997 = vperm.xlu1 %2564, %v970_v63  }
  0x36   : > { %988 = vperm.xlu0 %2571, %v967_v58  }
  0x39   : > { %2565 = vset.pattern.permute.xlu1 %v2655_v57 }
  0x3a   : > { %991 = vperm.xlu0 %2571, %v968_v59   ;;  %1224 = vperm.xlu1 %2565, %v970_v63  }
  0x3e   : > { %1000 = vperm.xlu0 %2571, %v971_v0   ;;  %1227 = vperm.xlu1 %2565, %v971_v0  }
  0x42   : > { %1003 = vperm.xlu0 %2571, %v972_v60   ;;  %2566 = vset.pattern.permute.xlu1 %v2652_v8 }
  0x43   : > { %1006 = vperm.xlu1 %2566, %v973_v1  }
  0x46   : > { %1012 = vperm.xlu0 %2571, %v975_v2  }
  0x47   : > { %2567 = vset.pattern.permute.xlu1 %v2655_v57 }
  0x48   : > { %1233 = vperm.xlu1 %2567, %v973_v1  }
  0x4a   : > { %1015 = vperm.xlu0 %2571, %v976_v62  }
  0x4c   : > { %2568 = vset.pattern.permute.xlu1 %v2652_v8 }
  0x4d   : > { %1009 = vperm.xlu1 %2568, %v974_v5  }
  0x4e   : > { %1024 = vperm.xlu0 %2571, %v979_v3  }
  0x51   : > { %2569 = vset.pattern.permute.xlu1 %v2655_v57 }
  0x52   : > { %1027 = vperm.xlu0 %2571, %v980_v6   ;;  %1236 = vperm.xlu1 %2569, %v974_v5  }
  0x56   : > { %2576 = vset.pattern.permute.xlu0 %v2655_v57  ;;  %1239 = vperm.xlu1 %2569, %v975_v2  }
  0x57   : > { %1254 = vperm.xlu0 %2576, %v980_v6  }
  0x5a   : > { %2570 = vset.pattern.permute.xlu1 %v2652_v8 }
  0x5b   : > { %2579 = vset.pattern.permute.xlu0 %v2652_v8  ;;  %1018 = vperm.xlu1 %2570, %v977_v7  }
  0x5f   : > { %2572 = vset.pattern.permute.xlu1 %v2655_v57 }
  0x60   : > { %1245 = vperm.xlu1 %2572, %v977_v7  }
  0x64   : > { %2573 = vset.pattern.permute.xlu1 %v2652_v8 }
  0x65   : > { %1021 = vperm.xlu1 %2573, %v978_v10  }
  0x69   : > { %2574 = vset.pattern.permute.xlu1 %v2655_v57 }
  0x6a   : > { %1248 = vperm.xlu1 %2574, %v978_v10  }
  0x6e   : > { %1251 = vperm.xlu1 %2574, %v979_v3  }
  0x72   : > { %2575 = vset.pattern.permute.xlu1 %v2652_v8 }
  0x73   : > { %1030 = vperm.xlu1 %2575, %v981_v11  }
  0x77   : > { %2577 = vset.pattern.permute.xlu1 %v2655_v57 }
  0x78   : > { %1257 = vperm.xlu1 %2577, %v981_v11  }
  0x7c   : > { %2578 = vset.pattern.permute.xlu1 %v2652_v8  ;;  %v874_v8 = vld [vmem:[%s3312_s9 + $0x20] sm:$0xff] }
  0x7d   : > { %v2440_v31 = vpack.c.bf16 %v875_v24, %v874_v8  ;;  %v2050_v24 = vld [vmem:[%s3313_s10] ss:$0 sm:$0xff] }
  0x89   : > { %v865_v35 = vpop.permute.xlu1 %864 }
  0x8a   : > { %v869_v39 = vsel %vm636_vm11, %v2989_v25, %v865_v35 }
  0x91   : > { %v634_v41 = vpop.permute.xlu0 %633 }
  0x95   : > { %v863_v27 = vpop.permute.xlu0 %862 }
  0x96   : > { %v868_v32 = vsel %vm636_vm11, %v2989_v25, %v863_v27 }
  0x9a   : > { %v986_v37 = vpop.permute.xlu1 %985 }
  0x9b   : > { %vm1032_vm0 = vcmp.eq.s32.totalorder %v3005_v38, %v986_v37 }
  0xa0   : > { %v1213_v40 = vpop.permute.xlu1 %1212 }
  0xa1   : > { %vm1259_vm13 = vcmp.eq.s32.totalorder %v3005_v38, %v1213_v40 }
  0xfa   : > { %v2228_v42 = vpop.f32.mrb[0].mxu0 }
  0xfb   : > { %v613_v43 = vpop.f32.mrb[1].mxu0  ;;  %v639_v48 = vsel %vm636_vm11, %v2228_v42, %v634_v41  ;;  %v2077_v42 = vsel %vm1259_vm13, 1.0, %v2654_v26 }
  0xfc   : > { %v2229_v44 = vpop.f32.mrb[2].mxu0  ;;  %v637_v45 = vsel %vm636_vm11, %v613_v43, %v634_v41  ;;  %v1216_v43 = vpop.permute.xlu1 %1215 }
  0xfd   : > { %v616_v46 = vpop.f32.mrb[3].mxu0  ;;  %2246 = vmatprep.mubr.msk.f32.mxu1 %vm649_vm12, %v637_v45  ;;  %v640_v49 = vsel %vm636_vm11, %v2229_v44, %v634_v41  ;;  %vm1260_vm14 = vcmp.eq.s32.totalorder %v3005_v38, %v1216_v43 }
  0xfe   : > { %v638_v47 = vsel %vm636_vm11, %v616_v46, %v634_v41  ;;  %v3011_v41 = vpop.permute.xlu0 %1218  ;;  %v2078_v4 = vsel %vm1260_vm14, 1.0, %v2654_v26 }
  0xff   : > { %2247 = vmatmul.mubr.msk.f32.vlgmr.msra.gmra.mrb[0].mxu1 %vm649_vm12, %v638_v47  ;;  %v1307_v45 = vpack.c.bf16 %v2078_v4, %v2077_v42  ;;  %v2053_v47 = vsel %vm1032_vm0, 1.0, %v2654_v26  ;;  %vm1261_vm10 = vcmp.eq.s32.totalorder %v3005_v38, %v3011_v41 }
 0x100   : > { %2249 = vmatprep.mubr.msk.f32.mxu1 %vm649_vm12, %v639_v48  ;;  %v995_v51 = vpop.permute.xlu1 %994  ;;  %v2079_v41 = vsel %vm1261_vm10, 1.0, %v2654_v26 }
 0x101   : > { %vm1035_vm2 = vcmp.eq.s32.totalorder %v3005_v38, %v995_v51 }
 0x102   : > { %v3015_v44 = vpop.permute.xlu0 %1230  ;;  %v2056_v11 = vsel %vm1035_vm2, 1.0, %v2654_v26 }
 0x103   : > { %2250 = vmatmul.mubr.msk.f32.gmra.mrb[2].mxu1 %vm649_vm12, %v640_v49 }
 0x104   : > { %v3026_v52 = vpop.permute.xlu1 %1221 }
 0x105   : > { %vm1262_vm13 = vcmp.eq.s32.totalorder %v3005_v38, %v3026_v52 }
 0x106   : > { %v3019_v46 = vpop.permute.xlu0 %1242  ;;  %v2080_v42 = vsel %vm1262_vm13, 1.0, %v2654_v26 }
 0x108   : > { %v998_v53 = vpop.permute.xlu1 %997 }
 0x109   : > { %vm1036_vm4 = vcmp.eq.s32.totalorder %v3005_v38, %v998_v53 }
 0x10a   : > { %v989_v48 = vpop.permute.xlu0 %988 }
 0x10b   : > { %vm1033_vm1 = vcmp.eq.s32.totalorder %v3005_v38, %v989_v48 }
 0x10c   : > { %v2054_v49 = vsel %vm1033_vm1, 1.0, %v2654_v26  ;;  %v3028_v54 = vpop.permute.xlu1 %1224  ;;  %vm1341_vm1 = vcmask 1044480  }
 0x10d   : > { %v1080_v50 = vpack.c.bf16 %v2054_v49, %v2053_v47  ;;  %vm1263_vm14 = vcmp.eq.s32.totalorder %v3005_v38, %v3028_v54  ;;  %v1308_v49 = vpack.c.bf16 %v2080_v42, %v2079_v41 }
 0x10e   : > { %v992_v61 = vpop.permute.xlu0 %991  ;;  %v2081_v43 = vsel %vm1263_vm14, 1.0, %v2654_v26  ;;  %vm1269_vm14 = vcmp.eq.s32.totalorder %v3005_v38, %v3019_v46 }
 0x10f   : > { %2289 = vmatprep.mubr.msk.bf16.mxu1 %vm636_vm11, %v1080_v50  ;;  %vm1034_vm3 = vcmp.eq.s32.totalorder %v3005_v38, %v992_v61 }
 0x112   : > { %v1001_v63 = vpop.permute.xlu0 %1000 }
 0x113   : > { %vm1037_vm5 = vcmp.eq.s32.totalorder %v3005_v38, %v1001_v63 }
 0x116   : > { %v1004_v5 = vpop.permute.xlu0 %1003 }
 0x117   : > { %vm1038_vm7 = vcmp.eq.s32.totalorder %v3005_v38, %v1004_v5  ;;  %v2087_v5 = vsel %vm1269_vm14, 1.0, %v2654_v26 }
 0x11a   : > { %v1013_v14 = vpop.permute.xlu0 %1012 }
 0x11b   : > { %vm1041_vm9 = vcmp.eq.s32.totalorder %v3005_v38, %v1013_v14 }
 0x11e   : > { %v1016_v8 = vpop.permute.xlu0 %1015 }
 0x1d2   : > { %v2248_v12 = vpop.f32.mrb[0].mxu1 }
 0x1d3   : > { %v728_v15 = vpop.f32.mrb[1].mxu1  ;;  %v748_v20 = vmax.f32 %v2248_v12, 0.0  ;;  %v2055_v12 = vsel %vm1034_vm3, 1.0, %v2654_v26  ;;  %vm1042_vm3 = vcmp.eq.s32.totalorder %v3005_v38, %v1016_v8  ;;  %v1561_v8 = vld [vmem:[%s3314_s11 + $0x8] sm:$0xff] }
 0x1d4   : > { %v747_v16 = vmax.f32 %v728_v15, 0.0  ;;  %v2057_v15 = vsel %vm1036_vm4, 1.0, %v2654_v26  ;;  %v2063_v48 = vsel %vm1042_vm3, 1.0, %v2654_v26 }
 0x1d6   : > { %v2251_v23 = vpop.f32.mrb[2].mxu1  ;;  %2260 = vmatprep.mubr.msk.f32.mxu0 %vm636_vm11, %v747_v16  ;;  %v2058_v16 = vsel %vm1037_vm5, 1.0, %v2654_v26 }
 0x1d7   : > { %v738_v28 = vpop.f32.mrb[3].mxu1  ;;  %2261 = vmatmul.mubr.msk.f32.vlgmr.msra.gmra.mrb[4].mxu0 %vm636_vm11, %v748_v20  ;;  %v750_v30 = vmax.f32 %v2251_v23, 0.0  ;;  %v1081_v20 = vpack.c.bf16 %v2056_v11, %v2055_v12 }
 0x1d8   : > { %v749_v29 = vmax.f32 %v738_v28, 0.0  ;;  %2435 = vmatpush3.bf16.msra.mxu0 %v2901_v55  ;;  %v3030_v55 = vpop.permute.xlu1 %1227  ;;  %v2059_v28 = vsel %vm1038_vm7, 1.0, %v2654_v26 }
 0x1d9   : > { %2437 = vmatprep.subr.bf16.mxu0 %v2436_v21  ;;  %vm1264_vm0 = vcmp.eq.s32.totalorder %v3005_v38, %v3030_v55 }
 0x1da   : > { %2263 = vmatprep.mubr.msk.f32.mxu0 %vm636_vm11, %v749_v29  ;;  %v2082_v4 = vsel %vm1264_vm0, 1.0, %v2654_v26 }
 0x1db   : > { %2264 = vmatmul.mubr.msk.f32.gmra.mrb[6].mxu0 %vm636_vm11, %v750_v30  ;;  %v2062_v30 = vsel %vm1041_vm9, 1.0, %v2654_v26  ;;  %v1309_v52 = vpack.c.bf16 %v2082_v4, %v2081_v43 }
 0x1dc   : > { %2439 = vmatpush3.bf16.msra.mxu0 %v2436_v21  ;;  %2282 = vmatprep.mubr.msk.f32.mxu0 %vm649_vm12, %v868_v32  ;;  %v1007_v56 = vpop.permute.xlu1 %1006  ;;  %v1082_v21 = vpack.c.bf16 %v2058_v16, %v2057_v15 }
 0x1dd   : > { %2441 = vmatprep.subr.bf16.mxu0 %v2440_v31  ;;  %vm1039_vm6 = vcmp.eq.s32.totalorder %v3005_v38, %v1007_v56 }
 0x1de   : > { %v2060_v27 = vsel %vm1039_vm6, 1.0, %v2654_v26  ;;  %vm1265_vm6 = vcmp.eq.s32.totalorder %v3005_v38, %v3015_v44 }
 0x1df   : > { %v1083_v34 = vpack.c.bf16 %v2060_v27, %v2059_v28  ;;  %v2083_v44 = vsel %vm1265_vm6, 1.0, %v2654_v26  ;;  %v1563_v28 = vld [vmem:[%s3314_s11 + $0x18] sm:$0xff] }
 0x1e0   : > { %2443 = vmatpush3.bf16.msra.mxu0 %v2440_v31  ;;  %v3032_v57 = vpop.permute.xlu1 %1233 }
 0x1e1   : > { %2445 = vmatprep.subr.bf16.mxu0 %v2444_v36  ;;  %vm1266_vm7 = vcmp.eq.s32.totalorder %v3005_v38, %v3032_v57 }
 0x1e2   : > { %v2084_v57 = vsel %vm1266_vm7, 1.0, %v2654_v26 }
 0x1e4   : > { %2447 = vmatpush3.bf16.msra.mxu0 %v2444_v36  ;;  %v1010_v58 = vpop.permute.xlu1 %1009 }
 0x1e5   : > { %vm1040_vm8 = vcmp.eq.s32.totalorder %v3005_v38, %v1010_v58 }
 0x1e6   : > { %v2061_v29 = vsel %vm1040_vm8, 1.0, %v2654_v26 }
 0x1e7   : > { %2283 = vmatmul.mubr.msk.f32.vlgmr.msra.gmra.mrb[8].mxu0 %vm649_vm12, %v869_v39  ;;  %v1084_v36 = vpack.c.bf16 %v2062_v30, %v2061_v29  ;;  %v1025_v39 = vpop.permute.xlu0 %1024 }
 0x1e8   : > { %2307 = vmatprep.mubr.msk.bf16.mxu0 %vm1316_vm15, %v1307_v45  ;;  %v3034_v59 = vpop.permute.xlu1 %1236  ;;  %vm1045_vm5 = vcmp.eq.s32.totalorder %v3005_v38, %v1025_v39 }
 0x1e9   : > { %v2066_v51 = vsel %vm1045_vm5, 1.0, %v2654_v26  ;;  %vm1267_vm8 = vcmp.eq.s32.totalorder %v3005_v38, %v3034_v59 }
 0x1ea   : > { %v2085_v58 = vsel %vm1267_vm8, 1.0, %v2654_v26  ;;  %vm2658_vm8 = vmmov 0  }
 0x1eb   : > { %v1028_v54 = vpop.permute.xlu0 %1027 }
 0x1ec   : > { %v3036_v60 = vpop.permute.xlu1 %1239  ;;  %vm1046_vm13 = vcmp.eq.s32.totalorder %v3005_v38, %v1028_v54 }
 0x1ed   : > { %vm1268_vm9 = vcmp.eq.s32.totalorder %v3005_v38, %v3036_v60  ;;  %v2067_v61 = vsel %vm1046_vm13, 1.0, %v2654_v26 }
 0x1ee   : > { %v2086_v59 = vsel %vm1268_vm9, 1.0, %v2654_v26  ;;  %vm1953_vm9 = vcmask 253952  }
 0x1ef   : > { %v1311_v63 = vpack.c.bf16 %v2086_v59, %v2085_v58  ;;  %v1255_v11 = vpop.permute.xlu0 %1254 }
 0x1f0   : > { %v3038_v62 = vpop.permute.xlu1 %1018 }
 0x1f1   : > { %vm1043_vm2 = vcmp.eq.s32.totalorder %v3005_v38, %v3038_v62  ;;  %v1310_v62 = vpack.c.bf16 %v2084_v57, %v2083_v44 }
 0x1f2   : > { %v2064_v47 = vsel %vm1043_vm2, 1.0, %v2654_v26 }
 0x1f3   : > { %v1085_v55 = vpack.c.bf16 %v2064_v47, %v2063_v48 }
 0x1f4   : > { %v3042_v1 = vpop.permute.xlu1 %1245 }
 0x1f5   : > { %vm1270_vm0 = vcmp.eq.s32.totalorder %v3005_v38, %v3042_v1 }
 0x1f8   : > { %v1022_v13 = vpop.permute.xlu1 %1021 }
 0x1f9   : > { %vm1044_vm4 = vcmp.eq.s32.totalorder %v3005_v38, %v1022_v13 }
 0x1fa   : > { %v2065_v50 = vsel %vm1044_vm4, 1.0, %v2654_v26  ;;  %vm1273_vm4 = vcmp.eq.s32.totalorder %v3005_v38, %v1255_v11 }
 0x1fb   : > { %v1086_v56 = vpack.c.bf16 %v2066_v51, %v2065_v50  ;;  %v2091_v16 = vsel %vm1273_vm4, 1.0, %v2654_v26 }
 0x1fc   : > { %v3067_v23 = vpop.permute.xlu1 %1248 }
 0x200   : > { %v1252_v37 = vpop.permute.xlu1 %1251 }
 0x201   : > { %vm1272_vm2 = vcmp.eq.s32.totalorder %v3005_v38, %v1252_v37 }
 0x202   : > { %v2090_v12 = vsel %vm1272_vm2, 1.0, %v2654_v26 }
 0x204   : > { %v1031_v53 = vpop.permute.xlu1 %1030 }
 0x205   : > { %vm1047_vm10 = vcmp.eq.s32.totalorder %v3005_v38, %v1031_v53 }
 0x206   : > { %v2068_v60 = vsel %vm1047_vm10, 1.0, %v2654_v26 }
 0x208   : > { %v1258_v46 = vpop.permute.xlu1 %1257 }
 0x209   : > { %vm1274_vm3 = vcmp.eq.s32.totalorder %v3005_v38, %v1258_v46 }
 0x20a   : > { %v2092_v15 = vsel %vm1274_vm3, 1.0, %v2654_v26 }
 0x2aa   : > { %v3040_v0 = vpop.f32.mrb[4].mxu0 }
 0x2ab   : > { %v3044_v2 = vpop.f32.mrb[5].mxu0 }
 0x2ac   : > { %v1088_v3 = vpack.c.bf16 %v3040_v0, %v3044_v2 }
 0x2ae   : > { %v3050_v6 = vpop.f32.mrb[6].mxu0  ;;  %2285 = vmatprep.subr.bf16.mxu1 %v1088_v3 }
 0x2af   : > { %v3054_v7 = vpop.f32.mrb[7].mxu0  ;;  %2286 = vmatpush3.bf16.msra.mxu1 %v1088_v3  ;;  %v1087_v3 = vpack.c.bf16 %v2068_v60, %v2067_v61 }
 0x2b0   : > { %v1089_v10 = vpack.c.bf16 %v3050_v6, %v3054_v7 }
 0x2b2   : > { %2287 = vmatprep.subr.bf16.mxu1 %v1089_v10 }
 0x2b3   : > { %2288 = vmatpush3.bf16.msra.mxu1 %v1089_v10  ;;  %v2088_v10 = vsel %vm1270_vm0, 1.0, %v2654_v26 }
 0x2b4   : > { %v1312_v13 = vpack.c.bf16 %v2088_v10, %v2087_v5 }
 0x2b6   : > { %2290 = vmatmul.mubr.msk.bf16.vlgmr.msra.gmra.mrb[4].mxu1 %vm636_vm11, %v1081_v20  ;;  %v1314_v20 = vpack.c.bf16 %v2092_v15, %v2091_v16 }
 0x2b7   : > { %2293 = vmatprep.mubr.msk.bf16.mxu1 %vm636_vm11, %v1082_v21  ;;  %v3144_v21 = vld [vmem:[%s3308_s5] ss:$0 sm:$0xff] }
 0x2b8   : > { %vm1463_vm5 = vcmp.eq.s32.totalorder %v2812_v9, %v3144_v21  ;;  %vm1465_vm6 = vcmp.eq.s32.totalorder %v2835_v19, %v3144_v21  ;;  %vm1466_vm7 = vcmp.eq.s32.totalorder %v2844_v22, %v3144_v21 }
 0x2ba   : > { %v2284_v31 = vpop.f32.mrb[8].mxu0 }
 0x2bb   : > { %v963_v32 = vadd.f32 %v2284_v31, %v2050_v24  ;;  %v957_v33 = vpop.f32.mrb[9].mxu0 }
 0x2bc   : > { %v958_v35 = vadd.f32 %v2050_v24, %v957_v33  ;;  %v1562_v24 = vld [vmem:[%s3314_s11 + $0x10] sm:$0xff] }
 0x2bd   : > { %v2484_v29 = vpack.c.bf16 %v1563_v28, %v1562_v24 }
 0x2be   : > { %v1315_v40 = vpack.c.bf16 %v963_v32, %v958_v35  ;;  %2294 = vmatmul.mubr.msk.bf16.gmra.mrb[8].mxu1 %vm636_vm11, %v1083_v34 }
 0x2bf   : > { %2297 = vmatprep.mubr.msk.bf16.mxu1 %vm636_vm11, %v1084_v36 }
 0x2c0   : > { %2512 = vmatprep.subr.msk.bf16.mxu0 %vm1341_vm1, %v1315_v40  ;;  %v1343_v45 = vsel %vm1341_vm1, %v1315_v40, 0  ;;  %vm1271_vm1 = vcmp.eq.s32.totalorder %v3005_v38, %v3067_v23  ;;  %v2656_v38 = vmov 1.0   ;;  %v1560_v23 = vld [vmem:[%s3314_s11] sm:$0xff] }
 0x2c1   : > { %2306 = vmatpush3.bf16.msra.mxu0 %v1343_v45  ;;  %v2089_v1 = vsel %vm1271_vm1, 1.0, %v2654_v26  ;;  %v2480_v27 = vpack.c.bf16 %v1561_v8, %v1560_v23 }
 0x2c2   : > { %v1313_v14 = vpack.c.bf16 %v2090_v12, %v2089_v1 }
 0x2c3   : > { %2481 = vmatprep.subr.bf16.mxu0 %v2480_v27 }
 0x2c4   : > { %2308 = vmatmul.mubr.msk.bf16.vlgmr.msra.gmra.mrb[12].mxu0 %vm1316_vm15, %v1308_v49 }
 0x2c5   : > { %2311 = vmatprep.mubr.msk.bf16.mxu0 %vm1316_vm15, %v1309_v52  ;;  %2483 = vmatpush3.bf16.msra.mxu0 %v2480_v27 }
 0x2c6   : > { %2298 = vmatmul.mubr.msk.bf16.gmra.mrb[12].mxu1 %vm636_vm11, %v1085_v55  ;;  %2485 = vmatprep.subr.bf16.mxu0 %v2484_v29 }
 0x2c7   : > { %2301 = vmatprep.mubr.msk.bf16.mxu1 %vm636_vm11, %v1086_v56 }
 0x2c9   : > { %2487 = vmatpush3.bf16.msra.mxu0 %v2484_v29 }
 0x2cc   : > { %2312 = vmatmul.mubr.msk.bf16.gmra.mrb[16].mxu0 %vm1316_vm15, %v1310_v62 }
 0x2cd   : > { %2315 = vmatprep.mubr.msk.bf16.mxu0 %vm1316_vm15, %v1311_v63 }
 0x2ce   : > { %2302 = vmatmul.mubr.msk.bf16.gmra.mrb[16].mxu1 %vm636_vm11, %v1087_v3 }
 0x2cf   : > { %2355 = vmatprep.mubr.msk.f32.mxu1 %vm1463_vm5, %v2656_v38 }
 0x2d4   : > { %2316 = vmatmul.mubr.msk.bf16.gmra.mrb[20].mxu0 %vm1316_vm15, %v1312_v13 }
 0x2d5   : > { %2319 = vmatprep.mubr.msk.bf16.mxu0 %vm1316_vm15, %v1313_v14 }
 0x2dc   : > { %2320 = vmatmul.mubr.msk.bf16.gmra.mrb[24].mxu0 %vm1316_vm15, %v1314_v20  ;;  %vm1464_vm15 = vcmp.eq.s32.totalorder %v2831_v17, %v3144_v21 }
 0x389   : > { %v2291_v30 = vpop.f32.mrb[4].mxu1 }
 0x38a   : > { %v1148_v31 = vpop.f32.mrb[5].mxu1 }
 0x38b   : > { %v2292_v32 = vpop.f32.mrb[6].mxu1 }
 0x38c   : > { %v1151_v33 = vpop.f32.mrb[7].mxu1 }
 0x391   : > { %v2295_v34 = vpop.f32.mrb[8].mxu1 }
 0x392   : > { %v1164_v35 = vpop.f32.mrb[9].mxu1 }
 0x393   : > { %v2296_v36 = vpop.f32.mrb[10].mxu1 }
 0x394   : > { %v1167_v37 = vpop.f32.mrb[11].mxu1 }
 0x397   : > { %v2309_v39 = vpop.f32.mrb[12].mxu0 }
 0x398   : > { %v1444_v40 = vmul.f32 %v2309_v39, %v2291_v30  ;;  %v1379_v41 = vpop.f32.mrb[13].mxu0 }
 0x399   : > { %v1442_v42 = vmul.f32 %v1379_v41, %v1148_v31  ;;  %v2310_v43 = vpop.f32.mrb[14].mxu0  ;;  %v2299_v4 = vpop.f32.mrb[12].mxu1 }
 0x39a   : > { %v1445_v45 = vmul.f32 %v2310_v43, %v2292_v32  ;;  %v1382_v47 = vpop.f32.mrb[15].mxu0  ;;  %v1180_v48 = vpop.f32.mrb[13].mxu1 }
 0x39b   : > { %v1443_v49 = vmul.f32 %v1382_v47, %v1151_v33  ;;  %v2300_v50 = vpop.f32.mrb[14].mxu1 }
 0x39c   : > { %v2452_v51 = vpack.c.bf16 %v1445_v45, %v1444_v40  ;;  %v1183_v52 = vpop.f32.mrb[15].mxu1 }
 0x39d   : > { %v2448_v53 = vpack.c.bf16 %v1443_v49, %v1442_v42 }
 0x39f   : > { %v2313_v54 = vpop.f32.mrb[16].mxu0  ;;  %2449 = vmatprep.subr.bf16.mxu1 %v2448_v53 }
 0x3a0   : > { %v1448_v55 = vmul.f32 %v2313_v54, %v2295_v34  ;;  %v1395_v56 = vpop.f32.mrb[17].mxu0  ;;  %2451 = vmatpush3.bf16.msra.mxu1 %v2448_v53  ;;  %v1742_v53 = vld [vmem:[%s3315_s12 + $0x8] sm:$0xff] }
 0x3a1   : > { %v1446_v44 = vmul.f32 %v1395_v56, %v1164_v35  ;;  %v2314_v57 = vpop.f32.mrb[18].mxu0  ;;  %2453 = vmatprep.subr.bf16.mxu1 %v2452_v51  ;;  %v2303_v58 = vpop.f32.mrb[16].mxu1  ;;  %v1744_v56 = vld [vmem:[%s3315_s12 + $0x18] sm:$0xff] }
 0x3a2   : > { %v1449_v59 = vmul.f32 %v2314_v57, %v2296_v36  ;;  %v1398_v60 = vpop.f32.mrb[19].mxu0  ;;  %v1196_v61 = vpop.f32.mrb[17].mxu1  ;;  %v1745_v57 = vld [vmem:[%s3315_s12 + $0x20] sm:$0xff] }
 0x3a3   : > { %v1447_v62 = vmul.f32 %v1398_v60, %v1167_v37  ;;  %v2304_v63 = vpop.f32.mrb[18].mxu1  ;;  %v1747_v60 = vld [vmem:[%s3315_s12 + $0x30] sm:$0xff] }
 0x3a4   : > { %v2460_v3 = vpack.c.bf16 %v1449_v59, %v1448_v55  ;;  %2455 = vmatpush3.bf16.msra.mxu1 %v2452_v51  ;;  %v1199_v5 = vpop.f32.mrb[19].mxu1  ;;  %v1743_v55 = vld [vmem:[%s3315_s12 + $0x10] sm:$0xff] }
 0x3a5   : > { %v2456_v10 = vpack.c.bf16 %v1447_v62, %v1446_v44  ;;  %v2492_v44 = vpack.c.bf16 %v1744_v56, %v1743_v55 }
 0x3a7   : > { %v2317_v46 = vpop.f32.mrb[20].mxu0  ;;  %2457 = vmatprep.subr.bf16.mxu1 %v2456_v10 }
 0x3a8   : > { %v1452_v11 = vmul.f32 %v2317_v46, %v2299_v4  ;;  %v1411_v1 = vpop.f32.mrb[21].mxu0  ;;  %2459 = vmatpush3.bf16.msra.mxu1 %v2456_v10 }
 0x3a9   : > { %v1450_v12 = vmul.f32 %v1411_v1, %v1180_v48  ;;  %v2318_v13 = vpop.f32.mrb[22].mxu0  ;;  %2461 = vmatprep.subr.bf16.mxu1 %v2460_v3 }
 0x3aa   : > { %v1453_v14 = vmul.f32 %v2318_v13, %v2300_v50  ;;  %v1414_v15 = vpop.f32.mrb[23].mxu0 }
 0x3ab   : > { %v1451_v16 = vmul.f32 %v1414_v15, %v1183_v52  ;;  %v1741_v52 = vld [vmem:[%s3315_s12] sm:$0xff] }
 0x3ac   : > { %v2468_v20 = vpack.c.bf16 %v1453_v14, %v1452_v11  ;;  %2463 = vmatpush3.bf16.msra.mxu1 %v2460_v3  ;;  %v2488_v54 = vpack.c.bf16 %v1742_v53, %v1741_v52 }
 0x3ad   : > { %v2464_v23 = vpack.c.bf16 %v1451_v16, %v1450_v12 }
 0x3af   : > { %v2321_v8 = vpop.f32.mrb[24].mxu0  ;;  %2465 = vmatprep.subr.bf16.mxu1 %v2464_v23 }
 0x3b0   : > { %v1456_v24 = vmul.f32 %v2321_v8, %v2303_v58  ;;  %v1427_v27 = vpop.f32.mrb[25].mxu0  ;;  %2467 = vmatpush3.bf16.msra.mxu1 %v2464_v23  ;;  %v1746_v58 = vld [vmem:[%s3315_s12 + $0x28] sm:$0xff] }
 0x3b1   : > { %v1454_v28 = vmul.f32 %v1427_v27, %v1196_v61  ;;  %v2322_v29 = vpop.f32.mrb[26].mxu0  ;;  %2469 = vmatprep.subr.bf16.mxu1 %v2468_v20  ;;  %v2496_v59 = vpack.c.bf16 %v1746_v58, %v1745_v57  ;;  %v1748_v61 = vld [vmem:[%s3315_s12 + $0x38] sm:$0xff] }
 0x3b2   : > { %v1457_v30 = vmul.f32 %v2322_v29, %v2304_v63  ;;  %v1430_v31 = vpop.f32.mrb[27].mxu0  ;;  %v2500_v62 = vpack.c.bf16 %v1748_v61, %v1747_v60  ;;  %v2657_v61 = vmov 0.0|0.0  }
 0x3b3   : > { %v1455_v32 = vmul.f32 %v1430_v31, %v1199_v5  ;;  %2504 = vmatprep.subr.bf16.mxu0 %v2657_v61 }
 0x3b4   : > { %v2476_v33 = vpack.c.bf16 %v1457_v30, %v1456_v24  ;;  %2471 = vmatpush3.bf16.msra.mxu1 %v2468_v20 }
 0x3b5   : > { %v2472_v34 = vpack.c.bf16 %v1455_v32, %v1454_v28 }
 0x3b7   : > { %2473 = vmatprep.subr.bf16.mxu1 %v2472_v34 }
 0x3b8   : > { %2475 = vmatpush3.bf16.msra.mxu1 %v2472_v34 }
 0x3b9   : > { %2477 = vmatprep.subr.bf16.mxu1 %v2476_v33 }
 0x3bc   : > { %2479 = vmatpush3.bf16.msra.mxu1 %v2476_v33 }
 0x3bd   : > { %2489 = vmatprep.subr.bf16.mxu1 %v2488_v54 }
 0x3bf   : > { %2356 = vmatmul.mubr.msk.f32.vlgmr.msra.gmra.mrb[20].mxu1 %vm1464_vm15, %v2656_v38 }
 0x3c0   : > { %2358 = vmatprep.mubr.msk.f32.mxu1 %vm1465_vm6, %v2656_v38  ;;  %2491 = vmatpush3.bf16.msra.mxu1 %v2488_v54 }
 0x3c1   : > { %2493 = vmatprep.subr.bf16.mxu1 %v2492_v44 }
 0x3c3   : > { %2359 = vmatmul.mubr.msk.f32.gmra.mrb[22].mxu1 %vm1466_vm7, %v2656_v38 }
 0x3c4   : > { %2495 = vmatpush3.bf16.msra.mxu1 %v2492_v44 }
 0x3c5   : > { %2497 = vmatprep.subr.bf16.mxu1 %v2496_v59 }
 0x3c8   : > { %2499 = vmatpush3.bf16.msra.mxu1 %v2496_v59 }
 0x3c9   : > { %2501 = vmatprep.subr.bf16.mxu1 %v2500_v62 }
 0x3cc   : > { %2503 = vmatpush3.bf16.msra.mxu1 %v2500_v62  ;;  %v1858_v62 = vld [vmem:[#allocation2] sm:$0x1] }
 0x492   : > { %v2357_v35 = vpop.f32.mrb[20].mxu1 }
 0x493   : > { %v1541_v36 = vpop.f32.mrb[21].mxu1 }
 0x494   : > { %2369 = vmatprep.mubr.msk.f32.mxu0 %vm636_vm11, %v1541_v36 }
 0x495   : > { %2370 = vmatmul.mubr.msk.f32.vlgmr.msra.gmra.mrb[10].mxu0 %vm636_vm11, %v2357_v35 }
 0x496   : > { %v2360_v37 = vpop.f32.mrb[22].mxu1 }
 0x497   : > { %v1551_v17 = vpop.f32.mrb[23].mxu1 }
 0x498   : > { %2372 = vmatprep.mubr.msk.f32.mxu0 %vm636_vm11, %v1551_v17 }
 0x499   : > { %2373 = vmatmul.mubr.msk.f32.gmra.mrb[28].mxu0 %vm636_vm11, %v2360_v37 }
 0x49a   : > { %2405 = vmatprep.mubr.msk.f32.mxu0 %vm2658_vm8, %v2654_v26 }
 0x568   : > { %v3174_v19 = vpop.f32.mrb[10].mxu0 }
 0x569   : > { %v3176_v39 = vpop.f32.mrb[11].mxu0  ;;  %v1664_v22 = vsel %vm636_vm11, %v3174_v19, 0.0  ;;  %v1679_v40 = vmul.f32 %v3174_v19, %v3174_v19 }
 0x56a   : > { %1665 = vadd.xlane.f32.xlu0 %v1664_v22  ;;  %v1661_v21 = vsel %vm636_vm11, %v3176_v39, 0.0  ;;  %v1678_v38 = vmul.f32 %v3176_v39, %v3176_v39 }
 0x56b   : > { %1662 = vadd.xlane.f32.xlu1 %v1661_v21  ;;  %v1685_v4 = vsel %vm636_vm11, %v1679_v40, 0.0 }
 0x56c   : > { %v3186_v41 = vpop.f32.mrb[28].mxu0  ;;  %v1682_v42 = vsel %vm636_vm11, %v1678_v38, 0.0 }
 0x56d   : > { %v3189_v43 = vpop.f32.mrb[29].mxu0  ;;  %v1670_v48 = vsel %vm636_vm11, %v3186_v41, 0.0  ;;  %v1681_v49 = vmul.f32 %v3186_v41, %v3186_v41 }
 0x56e   : > { %1683 = vadd.xlane.f32.xlu0 %v1682_v42  ;;  %v1667_v45 = vsel %vm636_vm11, %v3189_v43, 0.0  ;;  %v1680_v47 = vmul.f32 %v3189_v43, %v3189_v43 }
 0x56f   : > { %1686 = vadd.xlane.f32.xlu1 %v1685_v4  ;;  %v1691_v51 = vsel %vm636_vm11, %v1681_v49, 0.0 }
 0x570   : > { %v1688_v50 = vsel %vm636_vm11, %v1680_v47, 0.0 }
 0x572   : > { %1668 = vadd.xlane.f32.xlu0 %v1667_v45 }
 0x573   : > { %1671 = vadd.xlane.f32.xlu1 %v1670_v48 }
 0x576   : > { %1689 = vadd.xlane.f32.xlu0 %v1688_v50 }
 0x577   : > { %1692 = vadd.xlane.f32.xlu1 %v1691_v51 }
 0x588   : > { %1861 = vperm.xlu1 %2578, %v1858_v62  }
 0x58c   : > { %1734 = vrot.lane.b32.xlu0 %v2989_v25, %s3337_s19  ;;  %s2588_s19 = scalar_lea.vmem %s3263_s30, 16 }
 0x58d   : > { %p2589_p11 = scmp.ne.s32.totalorder %s3263_s30, %s2588_s19  ;;  %p2596_p1 = scmp.lt.s32.totalorder %s2594_s21, %s2588_s19 }
 0x58f   : > { %p2590_p12 = pnand %p2589_p11, %p2786_p5  ;;  %p2597_p2 = por %p2596_p1, %p2595_p0 }
 0x591   : > { %p2591_p13 = pneg %p2590_p12 }
 0x593   : > { %p2598_p3 = pnand %p2597_p2, %p2591_p13 }
 0x5f7   : > { %v1666_v25 = vpop.xlane.xlu0 %1665 }
 0x5f8   : > { %v1663_v63 = vpop.xlane.xlu1 %1662  ;;  %v1675_v3 = vmul.f32 0.03125, %v1666_v25 }
 0x5f9   : > { %v1674_v5 = vmul.f32 0.03125, %v1663_v63 }
 0x5fa   : > { %v1699_v12 = vmul.f32 %v1675_v3, %v1675_v3  ;;  %v1711_v4 = vsub.f32 %v3174_v19, %v1675_v3 }
 0x5fb   : > { %v1698_v10 = vmul.f32 %v1674_v5, %v1674_v5  ;;  %v1684_v46 = vpop.xlane.xlu0 %1683  ;;  %v1710_v40 = vsub.f32 %v3176_v39, %v1674_v5 }
 0x5fc   : > { %v1694_v11 = vmul.f32 0.03125, %v1684_v46  ;;  %v1687_v1 = vpop.xlane.xlu1 %1686 }
 0x5fd   : > { %v1695_v13 = vmul.f32 0.03125, %v1687_v1 }
 0x5fe   : > { %v1702_v14 = vsub.f32 %v1694_v11, %v1698_v10 }
 0x5ff   : > { %v1703_v15 = vsub.f32 %v1695_v13, %v1699_v12  ;;  %v1669_v16 = vpop.xlane.xlu0 %1668 }
 0x600   : > { %v1706_v20 = vmax.f32 %v1702_v14, 0.0  ;;  %v1676_v23 = vmul.f32 0.03125, %v1669_v16  ;;  %v1672_v8 = vpop.xlane.xlu1 %1671  ;;  %v1857_v16 = vld [vmem:[%s3317_s14] sm:$0x1] }
 0x601   : > { %v1707_v24 = vmax.f32 %v1703_v15, 0.0  ;;  %v1677_v27 = vmul.f32 0.03125, %v1672_v8 }
 0x602   : > { %v1714_v28 = vadd.f32 1e-05, %v1706_v20  ;;  %v1700_v31 = vmul.f32 %v1676_v23, %v1676_v23  ;;  %v1712_v54 = vsub.f32 %v3189_v43, %v1676_v23 }
 0x603   : > { %v1715_v29 = vadd.f32 1e-05, %v1707_v24  ;;  %v1690_v30 = vpop.xlane.xlu0 %1689  ;;  %v1701_v34 = vmul.f32 %v1677_v27, %v1677_v27  ;;  %v1713_v39 = vsub.f32 %v3186_v41, %v1677_v27 }
 0x604   : > { %2580 = vrsqrt.f32 %v1714_v28  ;;  %v1696_v32 = vmul.f32 0.03125, %v1690_v30  ;;  %v1693_v33 = vpop.xlane.xlu1 %1692 }
 0x605   : > { %2582 = vrsqrt.f32 %v1715_v29  ;;  %v1697_v35 = vmul.f32 0.03125, %v1693_v33 }
 0x606   : > { %v1704_v36 = vsub.f32 %v1696_v32, %v1700_v31 }
 0x607   : > { %v1705_v37 = vsub.f32 %v1697_v35, %v1701_v34  ;;  %v1735_v51 = vpop.permute.xlu0 %1734 }
 0x608   : > { %v1708_v17 = vmax.f32 %v1704_v36, 0.0  ;;  %v1862_v20 = vpop.permute.xlu1 %1861 }
 0x609   : > { %v1709_v22 = vmax.f32 %v1705_v37, 0.0  ;;  %v1867_v23 = vrot.slane %v1862_v20, %v552_v18 }
 0x60a   : > { %v1716_v21 = vadd.f32 1e-05, %v1708_v17 }
 0x60b   : > { %v1717_v38 = vadd.f32 1e-05, %v1709_v22 }
 0x60c   : > { %2584 = vrsqrt.f32 %v1716_v21 }
 0x60d   : > { %2586 = vrsqrt.f32 %v1717_v38 }
 0x60e   : > { %v2581_v42 = vpop.eup %2580 }
 0x60f   : > { %v2583_v45 = vpop.eup %2582  ;;  %v1722_v47 = vmul.f32 %v2581_v42, %v1710_v40 }
 0x610   : > { %v1723_v48 = vmul.f32 %v2583_v45, %v1711_v4 }
 0x611   : > { %v1726_v49 = vmax.f32 %v1722_v47, 0.0 }
 0x612   : > { %v1727_v50 = vmax.f32 %v1723_v48, 0.0 }
 0x613   : > { %v1730_v52 = vadd.f32 %v1726_v49, %v3044_v2 }
 0x614   : > { %v1731_v53 = vadd.f32 %v3040_v0, %v1727_v50 }
 0x615   : > { %v1737_v55 = vsel %vm636_vm11, %v1730_v52, %v1735_v51 }
 0x616   : > { %v2585_v56 = vpop.eup %2584  ;;  %v1738_v44 = vsel %vm636_vm11, %v1731_v53, %v1735_v51  ;;  %2391 = vmatprep.mubr.msk.f32.mxu1 %vm649_vm12, %v1737_v55 }
 0x617   : > { %v2587_v19 = vpop.eup %2586  ;;  %2392 = vmatmul.mubr.msk.f32.vlgmr.msra.gmra.mrb[24].mxu1 %vm649_vm12, %v1738_v44  ;;  %v1724_v57 = vmul.f32 %v2585_v56, %v1712_v54 }
 0x618   : > { %v1725_v58 = vmul.f32 %v2587_v19, %v1713_v39 }
 0x619   : > { %v1728_v59 = vmax.f32 %v1724_v57, 0.0 }
 0x61a   : > { %v1729_v2 = vmax.f32 %v1725_v58, 0.0 }
 0x61b   : > { %v1732_v0 = vadd.f32 %v1728_v59, %v3054_v7  ;;  %v2114_v7 = vld [vmem:[%s3316_s13] ss:$0 sm:$0xff] }
 0x61c   : > { %v1733_v43 = vadd.f32 %v3050_v6, %v1729_v2 }
 0x61d   : > { %v1739_v60 = vsel %vm636_vm11, %v1732_v0, %v1735_v51 }
 0x61e   : > { %2394 = vmatprep.mubr.msk.f32.mxu1 %vm649_vm12, %v1739_v60  ;;  %v1740_v41 = vsel %vm636_vm11, %v1733_v43, %v1735_v51 }
 0x61f   : > { %2395 = vmatmul.mubr.msk.f32.gmra.mrb[26].mxu1 %vm649_vm12, %v1740_v41  ;;  %vm2506_vm12 = vmpackc.low %vm636_vm11, %vm636_vm11 }
 0x6ea   : > { %v2393_v6 = vpop.f32.mrb[24].mxu1 }
 0x6eb   : > { %v1840_v25 = vadd.f32 %v2393_v6, %v2114_v7  ;;  %v1834_v63 = vpop.f32.mrb[25].mxu1 }
 0x6ec   : > { %v1835_v3 = vadd.f32 %v2114_v7, %v1834_v63 }
 0x6ed   : > { %v1854_v5 = vmax.f32 %v1840_v25, 0.0 }
 0x6ee   : > { %v1853_v10 = vmax.f32 %v1835_v3, 0.0 }
 0x6f0   : > { %v2505_v46 = vpack.c.bf16 %v1854_v5, %v1853_v10 }
 0x6f2   : > { %v2396_v11 = vpop.f32.mrb[26].mxu1  ;;  %2507 = vmatpush3.bf16.xpose.msk.msra.mxu0 %vm2506_vm12, %v2505_v46 }
 0x6f3   : > { %v1850_v26 = vadd.f32 %v2396_v11, %v2114_v7  ;;  %v1844_v1 = vpop.f32.mrb[27].mxu1  ;;  %2508 = vmatprep.subr.bf16.mxu0 %v2657_v61 }
 0x6f4   : > { %v1845_v12 = vadd.f32 %v2114_v7, %v1844_v1 }
 0x6f5   : > { %v1856_v13 = vmax.f32 %v1850_v26, 0.0 }
 0x6f6   : > { %v1855_v14 = vmax.f32 %v1845_v12, 0.0 }
 0x6f8   : > { %v2509_v15 = vpack.c.bf16 %v1856_v13, %v1855_v14 }
 0x6fa   : > { %2511 = vmatpush3.bf16.xpose.msk.msra.mxu0 %vm2506_vm12, %v2509_v15 }
 0x701   : > { %2406 = vmatmul.mubr.msk.f32.vlgmr.msra.gmra.mrb[30].mxu0 %vm636_vm11, %v1857_v16 }
 0x7d4   : > { %v1949_v8 = vpop.f32.mrb[30].mxu0 }
 0x7d5   : > { %v1950_v24 = vadd.f32 %v1949_v8, %v1867_v23  ;;  %v2407_v27 = vpop.f32.mrb[31].mxu0 }
 0x7d7   : > { %1954 = vst.msk [vmem:[%s522_s29] sm:$0x1] %vm1953_vm9, %v1950_v24 }
 0x7d8   : > { %2601 = shalt.err (!%p2598_p3)
}
 0x7d9   : > { %s2602_s0 = scalar_lea.hbm %s3261_s22, 16  ;;  %s2606_s29 = scalar_lea.hbm %s3319_s16, 32 }
 0x7da   : > { %p2603_p4 = scmp.ne.s32.totalorder %s3261_s22, %s2602_s0  ;;  %p2607_p9 = scmp.lt.u32.totalorder %s3261_s22, %s3319_s16 }
 0x7db   : > { %p2608_p10 = scmp.lt.u32.totalorder %s2606_s29, %s2602_s0  ;;  %p2610_p12 = scmp.lt.u32.totalorder %s2602_s0, %s3261_s22 }
 0x7dc   : > { %p2604_p7 = pnand %p2603_p4, %p2786_p5 }
 0x7dd   : > { %p2609_p11 = por %p2608_p10, %p2607_p9 }
 0x7de   : > { %p2605_p8 = pneg %p2604_p7 }
 0x7df   : > { %p2611_p13 = por %p2610_p12, %p2609_p11 }
 0x7e1   : > { %p2612_p0 = pnand %p2611_p13, %p2605_p8 }
 0x7e3   : > { %2615 = shalt.err (!%p2612_p0)
}
 0x7e4   : > { %2513 = dma.vmem_to_hbm [thread:$0]  (%p2786_p5), %s3263_s30, 16, %s3261_s22, %s1956_s1  }
 0x7e5 PF: > { %p2519_p1 = scmp.ge.s32.totalorder %s2650_s26, 2  ;;  %s1980_s19 = sand.u32 1, %s2638_s23  }
 0x7e6   : > { %s1981_s15 = scalar_lea.sflag [#allocation4], %s1980_s19 }
 0x7e7   : > { %p2516_p2 = pnand %p2519_p1, %p2790_p6 }
 0x7e9   : > { %2633 = dma.done.wait (!%p2516_p2), %s1981_s15, 16  }
 0x7ea   : > { %2635 = vsyncadd (!%p2516_p2), %s1981_s15, 4294967280  ;;  %s3338_s2 = sld [smem:[#allocation6_spill]]  ;;  %s3339_s25 = sld [smem:[#allocation7_spill]] }
 0x7eb   : > { %p28_p3 = scmp.ge.s32.totalorder %s2773_s28, 4   ;;  %s3340_s23 = smov %s2642_s24 }
 0x7ec   : > { %s3342_s26 = smov %s2773_s28 }
 0x7ed   :  { %30 = sbr.rel (!%p28_p3) target bundleno = 8 (0x8), region = 122 }
 0x7f0   : > { %s3341_s24 = smov %s3338_s2 }
 0x7f4   :  { %1985 = vsyncpa [#allocation4], 1 }
 0x7f5   :  { %1987 = vsyncpa [#allocation4 + $0x1], 1 }

</bundles_post_ra>
